<compile_context>
chip_gen: v5e
topology: v5e:2x2
jax: 0.10.0
libtpu: 0.0.40
codegen_flags: <defaults>
</compile_context>

<pallas_src>
import jax
import jax.numpy as jnp
from jax.experimental import pallas as pl
from jax.experimental.pallas import tpu as pltpu

COMPUTE_DTYPE = jnp.float32   # matmul input dtype for patches / weights (see TODO above)


def _round_up(x, m):
    return (x + m - 1) // m * m


def _pick_tile_rows(m, cap=512, split_threshold=256):
    """Pooled-row tile size for the conv kernels.

    cap=512 keeps double-buffered patch tiles well under v5e's 16 MiB scoped-VMEM
    default; when m is large enough we force >= 2 grid steps so v7x's two TensorCores
    each take half the rows ("parallel" grid axis).  Extra grid steps cost ~0.35 us on
    single-TC chips, which is negligible here.
    """
    if m >= split_threshold:
        return min(cap, _round_up(-(-m // 2), 8))
    return _round_up(m, 8)


# ----------------------------- Pallas kernels ------------------------------ #

def _conv_pool_kernel(p_ref, w_ref, b_ref, o_ref):
    """Fused conv(matmul) + bias + ReLU + 2x2 maxpool for one tile of pooled rows.

    p_ref: (4, tm, K) im2col patches; leading axis = position in the 2x2 pool window.
    w_ref: (K, Cout).  b_ref: (1, Cout) f32.  o_ref: (tm, Cout) f32.
    Identity used: relu(max_g(s_g) + b) == maxpool2x2(relu(conv + b))  (per-channel
    constant bias, monotone ReLU).  The 4 pool groups are stacked along sublanes so
    the MXU sees one long (4*tm, K) push instead of 4 short, drain-dominated ones.
    """
    tm = p_ref.shape[1]
    p = jnp.concatenate([p_ref[0], p_ref[1], p_ref[2], p_ref[3]], axis=0)   # (4*tm, K)
    s = jnp.dot(p, w_ref[...], preferred_element_type=jnp.float32)          # (4*tm, Cout)
    mx = jnp.maximum(jnp.maximum(s[0:tm], s[tm:2 * tm]),
                     jnp.maximum(s[2 * tm:3 * tm], s[3 * tm:4 * tm]))        # (tm, Cout)
    o_ref[...] = jnp.maximum(mx + b_ref[...], 0.0).astype(o_ref.dtype)


def _mlp_kernel(x_ref, w1_ref, b1_ref, w2_ref, b2_ref, w3_ref, b3_ref, o_ref):
    """fc1 -> ReLU -> fc2 -> ReLU -> fc3 fused; intermediates never leave VMEM/vregs."""
    h = jnp.dot(x_ref[...], w1_ref[...], preferred_element_type=jnp.float32)
    h = jnp.maximum(h + b1_ref[...], 0.0).astype(w2_ref.dtype)
    h = jnp.dot(h, w2_ref[...], preferred_element_type=jnp.float32)
    h = jnp.maximum(h + b2_ref[...], 0.0).astype(w3_ref.dtype)
    h = jnp.dot(h, w3_ref[...], preferred_element_type=jnp.float32)
    o_ref[...] = (h + b3_ref[...]).astype(o_ref.dtype)


# ------------------------------ wrappers ----------------------------------- #

def conv_relu_pool(x_nhwc, wmat, bias, k=5):
    """Valid conv (stride 1) + bias + ReLU + 2x2/2 maxpool in one pallas_call.

    x_nhwc: (N, H, W, Cin); wmat: (k*k*Cin, Cout) pre-reshaped weight (no padding);
    bias: (1, Cout) f32.  Returns (N, PH, PW, Cout) in NHWC.
    Requires even conv-output spatial dims (true for LeNet: 28, 10).
    """
    n, h, w_, cin = x_nhwc.shape
    oh, ow = h - k + 1, w_ - k + 1
    ph, pw = oh // 2, ow // 2
    kk = k * k * cin
    cout = wmat.shape[1]
    assert wmat.shape[0] == kk

    # im2col in NHWC (XLA side), grouped by position in the 2x2 pool window.
    # Patch minor order (kh, kw, c) matches prepare_params.conv_wmat.  No K pad.
    cols = [x_nhwc[:, kh:kh + oh, kw:kw + ow, :] for kh in range(k) for kw in range(k)]
    p = jnp.stack(cols, axis=3)                      # (N, OH, OW, k*k, Cin)
    p = p.reshape(n, ph, 2, pw, 2, kk)               # split the 2x2 pool windows
    p = p.transpose(2, 4, 0, 1, 3, 5)                # (2, 2, N, PH, PW, kk)
    p = p.reshape(4, n * ph * pw, kk).astype(wmat.dtype)

    m = n * ph * pw
    tm = _pick_tile_rows(m)
    m_pad = _round_up(m, tm)
    if m_pad != m:
        p = jnp.pad(p, ((0, 0), (0, m_pad - m), (0, 0)))
    num_tiles = m_pad // tm

    patch_kwargs = {}
    if num_tiles >= 3:
        # Deeper prefetch on the single large memory-bound stream; weights/bias stay
        # VMEM-resident via constant index_maps, so the extra buffer is cheap.
        patch_kwargs["pipeline_mode"] = pl.Buffered(3)

    flops = 2 * 4 * m_pad * kk * cout
    bytes_accessed = (p.size * p.dtype.itemsize + wmat.size * wmat.dtype.itemsize
                      + bias.size * 4 + m_pad * cout * 4)

    out = pl.pallas_call(
        _conv_pool_kernel,
        out_shape=jax.ShapeDtypeStruct((m_pad, cout), jnp.float32),
        grid_spec=pltpu.PrefetchScalarGridSpec(
            num_scalar_prefetch=0,
            grid=(num_tiles,),
            in_specs=[
                pl.BlockSpec((4, tm, kk), lambda i: (0, i, 0), **patch_kwargs),
                pl.BlockSpec((kk, cout), lambda i: (0, 0)),
                pl.BlockSpec((1, cout), lambda i: (0, 0)),
            ],
            out_specs=pl.BlockSpec((tm, cout), lambda i: (i, 0)),
        ),
        compiler_params=pltpu.CompilerParams(dimension_semantics=("parallel",)),
        cost_estimate=pl.CostEstimate(flops=flops, transcendentals=0,
                                      bytes_accessed=bytes_accessed),
    )(p, wmat, bias)

    return out[:m].reshape(n, ph, pw, cout)


def mlp(x, w1, b1, w2, b2, w3, b3, tile_rows=256):
    """Fused fc1(ReLU) -> fc2(ReLU) -> fc3, tiled over rows; weights VMEM-resident."""
    m, kin = x.shape
    tm = min(tile_rows, _round_up(m, 8))
    m_pad = _round_up(m, tm)
    x = x.astype(w1.dtype)
    if m_pad != m:
        x = jnp.pad(x, ((0, m_pad - m), (0, 0)))
    nout = w3.shape[1]
    num_tiles = m_pad // tm

    flops = 2 * m_pad * (w1.shape[0] * w1.shape[1] + w2.shape[0] * w2.shape[1]
                         + w3.shape[0] * w3.shape[1])
    bytes_accessed = (x.size * x.dtype.itemsize
                      + sum(int(a.size) * a.dtype.itemsize for a in (w1, b1, w2, b2, w3, b3))
                      + m_pad * nout * 4)

    out = pl.pallas_call(
        _mlp_kernel,
        out_shape=jax.ShapeDtypeStruct((m_pad, nout), jnp.float32),
        grid_spec=pltpu.PrefetchScalarGridSpec(
            num_scalar_prefetch=0,
            grid=(num_tiles,),
            in_specs=[
                pl.BlockSpec((tm, kin), lambda i: (i, 0)),
                pl.BlockSpec(w1.shape, lambda i: (0, 0)),
                pl.BlockSpec(b1.shape, lambda i: (0, 0)),
                pl.BlockSpec(w2.shape, lambda i: (0, 0)),
                pl.BlockSpec(b2.shape, lambda i: (0, 0)),
                pl.BlockSpec(w3.shape, lambda i: (0, 0)),
                pl.BlockSpec(b3.shape, lambda i: (0, 0)),
            ],
            out_specs=pl.BlockSpec((tm, nout), lambda i: (i, 0)),
        ),
        compiler_params=pltpu.CompilerParams(dimension_semantics=("parallel",)),
        cost_estimate=pl.CostEstimate(flops=flops, transcendentals=0,
                                      bytes_accessed=bytes_accessed),
    )(x, w1, b1, w2, b2, w3, b3)
    return out[:m]


# ------------------------- parameter preparation --------------------------- #

def init_params(key):
    """PyTorch-layout LeNet parameters (random, deterministic)."""
    ks = jax.random.split(key, 10)

    def w(k, shape, fan_in):
        return jax.random.normal(k, shape, jnp.float32) / jnp.sqrt(float(fan_in))

    return {
        "conv1_w": w(ks[0], (16, 3, 5, 5), 3 * 25),
        "conv1_b": w(ks[1], (16,), 3 * 25),
        "conv2_w": w(ks[2], (32, 16, 5, 5), 16 * 25),
        "conv2_b": w(ks[3], (32,), 16 * 25),
        "fc1_w": w(ks[4], (120, 800), 800),
        "fc1_b": w(ks[5], (120,), 800),
        "fc2_w": w(ks[6], (84, 120), 120),
        "fc2_b": w(ks[7], (84,), 120),
        "fc3_w": w(ks[8], (10, 84), 84),
        "fc3_b": w(ks[9], (10,), 84),
    }


def prepare_params(p):
    """One-time conversion of PyTorch-layout params to kernel layouts (no padding).

    Conv weights -> (k*k*Cin, Cout) with patch minor order (kh, kw, c); fc weights ->
    (in, out); biases -> (1, out) f32.  fc1's input columns are permuted once from
    PyTorch's NCHW flatten order (c, h, w) to our NHWC flatten order (h, w, c) so no
    runtime reordering is needed.
    """
    def conv_wmat(w):                           # (Cout, Cin, k, k) -> (k*k*Cin, Cout)
        cout, cin, k, _ = w.shape
        return w.transpose(2, 3, 1, 0).reshape(k * k * cin, cout).astype(COMPUTE_DTYPE)

    def fc_wmat(w):                             # (out, in) -> (in, out)
        return w.T.astype(COMPUTE_DTYPE)

    def bias_row(b):
        return b.reshape(1, -1).astype(jnp.float32)

    fc1_w_hwc = p["fc1_w"].reshape(120, 32, 5, 5).transpose(0, 2, 3, 1).reshape(120, 800)
    return {
        "conv1_w": conv_wmat(p["conv1_w"]), "conv1_b": bias_row(p["conv1_b"]),
        "conv2_w": conv_wmat(p["conv2_w"]), "conv2_b": bias_row(p["conv2_b"]),
        "fc1_w": fc_wmat(fc1_w_hwc),        "fc1_b": bias_row(p["fc1_b"]),
        "fc2_w": fc_wmat(p["fc2_w"]),       "fc2_b": bias_row(p["fc2_b"]),
        "fc3_w": fc_wmat(p["fc3_w"]),       "fc3_b": bias_row(p["fc3_b"]),
    }


# ------------------------------ forward pass -------------------------------- #

def lenet_forward(params, x_nchw):
    # PyTorch NCHW at the boundary; one transpose to NHWC, channel-last after that.
    x = x_nchw.transpose(0, 2, 3, 1)                                    # (N, 32, 32, 3)
    x = conv_relu_pool(x, params["conv1_w"], params["conv1_b"])         # (N, 14, 14, 16)
    x = conv_relu_pool(x, params["conv2_w"], params["conv2_b"])         # (N, 5, 5, 32)
    x = x.reshape(x.shape[0], 5 * 5 * 32)                               # NHWC flatten
    return mlp(x, params["fc1_w"], params["fc1_b"],
               params["fc2_w"], params["fc2_b"],
               params["fc3_w"], params["fc3_b"])                        # (N, 10)


# ------------------------------ reference ----------------------------------- #

def lenet_reference(p, x):
    """Pure-JAX reference matching the PyTorch module (NCHW, high precision)."""
    hp = jax.lax.Precision.HIGHEST

    def pool(y):
        return jnp.maximum(jnp.maximum(y[:, :, 0::2, 0::2], y[:, :, 0::2, 1::2]),
                           jnp.maximum(y[:, :, 1::2, 0::2], y[:, :, 1::2, 1::2]))

    y = jax.lax.conv_general_dilated(x, p["conv1_w"], (1, 1), "VALID",
                                     dimension_numbers=("NCHW", "OIHW", "NCHW"),
                                     precision=hp)
    y = pool(jax.nn.relu(y + p["conv1_b"][None, :, None, None]))
    y = jax.lax.conv_general_dilated(y, p["conv2_w"], (1, 1), "VALID",
                                     dimension_numbers=("NCHW", "OIHW", "NCHW"),
                                     precision=hp)
    y = pool(jax.nn.relu(y + p["conv2_b"][None, :, None, None]))
    y = y.reshape(y.shape[0], 32 * 5 * 5)
    y = jax.nn.relu(jnp.dot(y, p["fc1_w"].T, precision=hp) + p["fc1_b"])
    y = jax.nn.relu(jnp.dot(y, p["fc2_w"].T, precision=hp) + p["fc2_b"])
    return jnp.dot(y, p["fc3_w"].T, precision=hp) + p["fc3_b"]


if __name__ == "__main__":
    key = jax.random.PRNGKey(0)
    pkey, xkey = jax.random.split(key)
    torch_params = init_params(pkey)
    params = prepare_params(torch_params)            # one-time layout prep
    # LeNet's fc1 (32*5*5) implies a 3x32x32 input; batch = 2.
    x = jax.random.normal(xkey, (2, 3, 32, 32), jnp.float32)

    fwd = jax.jit(lenet_forward)
    out = jax.block_until_ready(fwd(params, x))
    assert out.shape == (2, 10) and out.dtype == jnp.float32

    ref = jax.block_until_ready(lenet_reference(torch_params, x))
    max_err = float(jnp.max(jnp.abs(out - ref)))
    assert max_err < 1e-2, f"mismatch vs reference: max abs err {max_err}"

    print("KERNEL_OK")
</pallas_src>

<mosaic_0001>
module attributes {stable_mosaic.version = 11 : i64} {
  func.func @_conv_pool_kernel(%arg0: i32, %arg1: memref<4x200x75xf32, #tpu.memory_space<vmem>>, %arg2: memref<75x16xf32, #tpu.memory_space<vmem>>, %arg3: memref<1x16xf32, #tpu.memory_space<vmem>>, %arg4: memref<200x16xf32, #tpu.memory_space<vmem>>) attributes {dimension_semantics = [#tpu.dimension_semantics<parallel>], iteration_bounds = array<i64: 2>, scalar_prefetch = 0 : i64, scratch_operands = 0 : i64, tpu.core_type = #tpu.core_type<tc>, window_params = [{transform_indices = @transform_0, window_bounds = array<i64: 4, 200, 75>}, {pipeline_mode = #tpu.pipeline_mode<synchronous>, transform_indices = @transform_1, window_bounds = array<i64: 75, 16>}, {pipeline_mode = #tpu.pipeline_mode<synchronous>, transform_indices = @transform_2, window_bounds = array<i64: 1, 16>}, {transform_indices = @transform_3, window_bounds = array<i64: 200, 16>}]} {
    %c0 = arith.constant 0 : index
    %c0_0 = arith.constant 0 : index
    %c0_1 = arith.constant 0 : index
    %0 = vector.load %arg1[%c0, %c0_0, %c0_1] : memref<4x200x75xf32, #tpu.memory_space<vmem>>, vector<1x200x75xf32>
    %1 = vector.shape_cast %0 : vector<1x200x75xf32> to vector<200x75xf32>
    %c1 = arith.constant 1 : index
    %c0_2 = arith.constant 0 : index
    %c0_3 = arith.constant 0 : index
    %2 = vector.load %arg1[%c1, %c0_2, %c0_3] : memref<4x200x75xf32, #tpu.memory_space<vmem>>, vector<1x200x75xf32>
    %3 = vector.shape_cast %2 : vector<1x200x75xf32> to vector<200x75xf32>
    %c2 = arith.constant 2 : index
    %c0_4 = arith.constant 0 : index
    %c0_5 = arith.constant 0 : index
    %4 = vector.load %arg1[%c2, %c0_4, %c0_5] : memref<4x200x75xf32, #tpu.memory_space<vmem>>, vector<1x200x75xf32>
    %5 = vector.shape_cast %4 : vector<1x200x75xf32> to vector<200x75xf32>
    %c3 = arith.constant 3 : index
    %c0_6 = arith.constant 0 : index
    %c0_7 = arith.constant 0 : index
    %6 = vector.load %arg1[%c3, %c0_6, %c0_7] : memref<4x200x75xf32, #tpu.memory_space<vmem>>, vector<1x200x75xf32>
    %7 = vector.shape_cast %6 : vector<1x200x75xf32> to vector<200x75xf32>
    %8 = tpu.concatenate %1, %3, %5, %7 in 0 : vector<200x75xf32>, vector<200x75xf32>, vector<200x75xf32>, vector<200x75xf32> -> vector<800x75xf32>
    %c0_8 = arith.constant 0 : index
    %c0_9 = arith.constant 0 : index
    %9 = vector.load %arg2[%c0_8, %c0_9] : memref<75x16xf32, #tpu.memory_space<vmem>>, vector<75x16xf32>
    %cst = arith.constant dense<0.000000e+00> : vector<800x16xf32>
    %10 = tpu.matmul %8, %9, %cst {dimension_numbers = #tpu.dot_dimension_numbers<[1], [0], [0], [1], [0, 0, 1, 1], [], []>} : vector<800x75xf32>, vector<75x16xf32>, vector<800x16xf32> -> vector<800x16xf32>
    %11 = vector.extract_strided_slice %10 {offsets = [0, 0], sizes = [200, 16], strides = [1, 1]} : vector<800x16xf32> to vector<200x16xf32>
    %12 = vector.extract_strided_slice %10 {offsets = [200, 0], sizes = [200, 16], strides = [1, 1]} : vector<800x16xf32> to vector<200x16xf32>
    %13 = arith.maximumf %11, %12 : vector<200x16xf32>
    %14 = vector.extract_strided_slice %10 {offsets = [400, 0], sizes = [200, 16], strides = [1, 1]} : vector<800x16xf32> to vector<200x16xf32>
    %15 = vector.extract_strided_slice %10 {offsets = [600, 0], sizes = [200, 16], strides = [1, 1]} : vector<800x16xf32> to vector<200x16xf32>
    %16 = arith.maximumf %14, %15 : vector<200x16xf32>
    %17 = arith.maximumf %13, %16 : vector<200x16xf32>
    %c0_10 = arith.constant 0 : index
    %c0_11 = arith.constant 0 : index
    %18 = vector.load %arg3[%c0_10, %c0_11] : memref<1x16xf32, #tpu.memory_space<vmem>>, vector<1x16xf32>
    %19 = vector.broadcast %18 : vector<1x16xf32> to vector<200x16xf32>
    %20 = arith.addf %17, %19 : vector<200x16xf32>
    %cst_12 = arith.constant 0.000000e+00 : f32
    %21 = vector.broadcast %cst_12 : f32 to vector<200x16xf32>
    %22 = arith.maximumf %20, %21 : vector<200x16xf32>
    %c0_13 = arith.constant 0 : index
    %c0_14 = arith.constant 0 : index
    %23 = vector.load %arg4[%c0_13, %c0_14] : memref<200x16xf32, #tpu.memory_space<vmem>>, vector<200x16xf32>
    tpu.vector_store %arg4[%c0_13, %c0_14], %22 {strides = array<i32>} : memref<200x16xf32, #tpu.memory_space<vmem>>, vector<200x16xf32>,
    return
  }
  func.func @transform_0(%arg0: i32) -> (i32, i32, i32) {
    %c0_i32 = arith.constant 0 : i32
    %c0_i32_0 = arith.constant 0 : i32
    %c0_i32_1 = arith.constant 0 : i32
    return %c0_i32, %arg0, %c0_i32_0 : i32, i32, i32
  }
  func.func @transform_1(%arg0: i32) -> (i32, i32) {
    %c0_i32 = arith.constant 0 : i32
    %c0_i32_0 = arith.constant 0 : i32
    %c0_i32_1 = arith.constant 0 : i32
    return %c0_i32, %c0_i32_0 : i32, i32
  }
  func.func @transform_2(%arg0: i32) -> (i32, i32) {
    %c0_i32 = arith.constant 0 : i32
    %c0_i32_0 = arith.constant 0 : i32
    %c0_i32_1 = arith.constant 0 : i32
    return %c0_i32, %c0_i32_0 : i32, i32
  }
  func.func @transform_3(%arg0: i32) -> (i32, i32) {
    %c0_i32 = arith.constant 0 : i32
    %c0_i32_0 = arith.constant 0 : i32
    return %arg0, %c0_i32 : i32, i32
  }
}

module attributes {stable_mosaic.version = 11 : i64} {
  func.func @_conv_pool_kernel(%arg0: i32, %arg1: memref<4x56x400xf32, #tpu.memory_space<vmem>>, %arg2: memref<400x32xf32, #tpu.memory_space<vmem>>, %arg3: memref<1x32xf32, #tpu.memory_space<vmem>>, %arg4: memref<56x32xf32, #tpu.memory_space<vmem>>) attributes {dimension_semantics = [#tpu.dimension_semantics<parallel>], iteration_bounds = array<i64: 1>, scalar_prefetch = 0 : i64, scratch_operands = 0 : i64, tpu.core_type = #tpu.core_type<tc>, window_params = [{transform_indices = @transform_0, window_bounds = array<i64: 4, 56, 400>}, {pipeline_mode = #tpu.pipeline_mode<synchronous>, transform_indices = @transform_1, window_bounds = array<i64: 400, 32>}, {pipeline_mode = #tpu.pipeline_mode<synchronous>, transform_indices = @transform_2, window_bounds = array<i64: 1, 32>}, {transform_indices = @transform_3, window_bounds = array<i64: 56, 32>}]} {
    %c0 = arith.constant 0 : index
    %c0_0 = arith.constant 0 : index
    %c0_1 = arith.constant 0 : index
    %0 = vector.load %arg1[%c0, %c0_0, %c0_1] : memref<4x56x400xf32, #tpu.memory_space<vmem>>, vector<1x56x400xf32>
    %1 = vector.shape_cast %0 : vector<1x56x400xf32> to vector<56x400xf32>
    %c1 = arith.constant 1 : index
    %c0_2 = arith.constant 0 : index
    %c0_3 = arith.constant 0 : index
    %2 = vector.load %arg1[%c1, %c0_2, %c0_3] : memref<4x56x400xf32, #tpu.memory_space<vmem>>, vector<1x56x400xf32>
    %3 = vector.shape_cast %2 : vector<1x56x400xf32> to vector<56x400xf32>
    %c2 = arith.constant 2 : index
    %c0_4 = arith.constant 0 : index
    %c0_5 = arith.constant 0 : index
    %4 = vector.load %arg1[%c2, %c0_4, %c0_5] : memref<4x56x400xf32, #tpu.memory_space<vmem>>, vector<1x56x400xf32>
    %5 = vector.shape_cast %4 : vector<1x56x400xf32> to vector<56x400xf32>
    %c3 = arith.constant 3 : index
    %c0_6 = arith.constant 0 : index
    %c0_7 = arith.constant 0 : index
    %6 = vector.load %arg1[%c3, %c0_6, %c0_7] : memref<4x56x400xf32, #tpu.memory_space<vmem>>, vector<1x56x400xf32>
    %7 = vector.shape_cast %6 : vector<1x56x400xf32> to vector<56x400xf32>
    %8 = tpu.concatenate %1, %3, %5, %7 in 0 : vector<56x400xf32>, vector<56x400xf32>, vector<56x400xf32>, vector<56x400xf32> -> vector<224x400xf32>
    %c0_8 = arith.constant 0 : index
    %c0_9 = arith.constant 0 : index
    %9 = vector.load %arg2[%c0_8, %c0_9] : memref<400x32xf32, #tpu.memory_space<vmem>>, vector<400x32xf32>
    %cst = arith.constant dense<0.000000e+00> : vector<224x32xf32>
    %10 = tpu.matmul %8, %9, %cst {dimension_numbers = #tpu.dot_dimension_numbers<[1], [0], [0], [1], [0, 0, 1, 1], [], []>} : vector<224x400xf32>, vector<400x32xf32>, vector<224x32xf32> -> vector<224x32xf32>
    %11 = vector.extract_strided_slice %10 {offsets = [0, 0], sizes = [56, 32], strides = [1, 1]} : vector<224x32xf32> to vector<56x32xf32>
    %12 = vector.extract_strided_slice %10 {offsets = [56, 0], sizes = [56, 32], strides = [1, 1]} : vector<224x32xf32> to vector<56x32xf32>
    %13 = arith.maximumf %11, %12 : vector<56x32xf32>
    %14 = vector.extract_strided_slice %10 {offsets = [112, 0], sizes = [56, 32], strides = [1, 1]} : vector<224x32xf32> to vector<56x32xf32>
    %15 = vector.extract_strided_slice %10 {offsets = [168, 0], sizes = [56, 32], strides = [1, 1]} : vector<224x32xf32> to vector<56x32xf32>
    %16 = arith.maximumf %14, %15 : vector<56x32xf32>
    %17 = arith.maximumf %13, %16 : vector<56x32xf32>
    %c0_10 = arith.constant 0 : index
    %c0_11 = arith.constant 0 : index
    %18 = vector.load %arg3[%c0_10, %c0_11] : memref<1x32xf32, #tpu.memory_space<vmem>>, vector<1x32xf32>
    %19 = vector.broadcast %18 : vector<1x32xf32> to vector<56x32xf32>
    %20 = arith.addf %17, %19 : vector<56x32xf32>
    %cst_12 = arith.constant 0.000000e+00 : f32
    %21 = vector.broadcast %cst_12 : f32 to vector<56x32xf32>
    %22 = arith.maximumf %20, %21 : vector<56x32xf32>
    %c0_13 = arith.constant 0 : index
    %c0_14 = arith.constant 0 : index
    %23 = vector.load %arg4[%c0_13, %c0_14] : memref<56x32xf32, #tpu.memory_space<vmem>>, vector<56x32xf32>
    tpu.vector_store %arg4[%c0_13, %c0_14], %22 {strides = array<i32>} : memref<56x32xf32, #tpu.memory_space<vmem>>, vector<56x32xf32>,
    return
  }
  func.func @transform_0(%arg0: i32) -> (i32, i32, i32) {
    %c0_i32 = arith.constant 0 : i32
    %c0_i32_0 = arith.constant 0 : i32
    %c0_i32_1 = arith.constant 0 : i32
    return %c0_i32, %arg0, %c0_i32_0 : i32, i32, i32
  }
  func.func @transform_1(%arg0: i32) -> (i32, i32) {
    %c0_i32 = arith.constant 0 : i32
    %c0_i32_0 = arith.constant 0 : i32
    %c0_i32_1 = arith.constant 0 : i32
    return %c0_i32, %c0_i32_0 : i32, i32
  }
  func.func @transform_2(%arg0: i32) -> (i32, i32) {
    %c0_i32 = arith.constant 0 : i32
    %c0_i32_0 = arith.constant 0 : i32
    %c0_i32_1 = arith.constant 0 : i32
    return %c0_i32, %c0_i32_0 : i32, i32
  }
  func.func @transform_3(%arg0: i32) -> (i32, i32) {
    %c0_i32 = arith.constant 0 : i32
    %c0_i32_0 = arith.constant 0 : i32
    return %arg0, %c0_i32 : i32, i32
  }
}

module attributes {stable_mosaic.version = 11 : i64} {
  func.func @_mlp_kernel(%arg0: i32, %arg1: memref<8x800xf32, #tpu.memory_space<vmem>>, %arg2: memref<800x120xf32, #tpu.memory_space<vmem>>, %arg3: memref<1x120xf32, #tpu.memory_space<vmem>>, %arg4: memref<120x84xf32, #tpu.memory_space<vmem>>, %arg5: memref<1x84xf32, #tpu.memory_space<vmem>>, %arg6: memref<84x10xf32, #tpu.memory_space<vmem>>, %arg7: memref<1x10xf32, #tpu.memory_space<vmem>>, %arg8: memref<8x10xf32, #tpu.memory_space<vmem>>) attributes {dimension_semantics = [#tpu.dimension_semantics<parallel>], iteration_bounds = array<i64: 1>, scalar_prefetch = 0 : i64, scratch_operands = 0 : i64, tpu.core_type = #tpu.core_type<tc>, window_params = [{transform_indices = @transform_0, window_bounds = array<i64: 8, 800>}, {pipeline_mode = #tpu.pipeline_mode<synchronous>, transform_indices = @transform_1, window_bounds = array<i64: 800, 120>}, {pipeline_mode = #tpu.pipeline_mode<synchronous>, transform_indices = @transform_2, window_bounds = array<i64: 1, 120>}, {pipeline_mode = #tpu.pipeline_mode<synchronous>, transform_indices = @transform_3, window_bounds = array<i64: 120, 84>}, {pipeline_mode = #tpu.pipeline_mode<synchronous>, transform_indices = @transform_4, window_bounds = array<i64: 1, 84>}, {pipeline_mode = #tpu.pipeline_mode<synchronous>, transform_indices = @transform_5, window_bounds = array<i64: 84, 10>}, {pipeline_mode = #tpu.pipeline_mode<synchronous>, transform_indices = @transform_6, window_bounds = array<i64: 1, 10>}, {transform_indices = @transform_7, window_bounds = array<i64: 8, 10>}]} {
    %c0 = arith.constant 0 : index
    %c0_0 = arith.constant 0 : index
    %0 = vector.load %arg1[%c0, %c0_0] : memref<8x800xf32, #tpu.memory_space<vmem>>, vector<8x800xf32>
    %c0_1 = arith.constant 0 : index
    %c0_2 = arith.constant 0 : index
    %1 = vector.load %arg2[%c0_1, %c0_2] : memref<800x120xf32, #tpu.memory_space<vmem>>, vector<800x120xf32>
    %cst = arith.constant dense<0.000000e+00> : vector<8x120xf32>
    %2 = tpu.matmul %0, %1, %cst {dimension_numbers = #tpu.dot_dimension_numbers<[1], [0], [0], [1], [0, 0, 1, 1], [], []>} : vector<8x800xf32>, vector<800x120xf32>, vector<8x120xf32> -> vector<8x120xf32>
    %c0_3 = arith.constant 0 : index
    %c0_4 = arith.constant 0 : index
    %3 = vector.load %arg3[%c0_3, %c0_4] : memref<1x120xf32, #tpu.memory_space<vmem>>, vector<1x120xf32>
    %4 = vector.broadcast %3 : vector<1x120xf32> to vector<8x120xf32>
    %5 = arith.addf %2, %4 : vector<8x120xf32>
    %cst_5 = arith.constant 0.000000e+00 : f32
    %6 = vector.broadcast %cst_5 : f32 to vector<8x120xf32>
    %7 = arith.maximumf %5, %6 : vector<8x120xf32>
    %c0_6 = arith.constant 0 : index
    %c0_7 = arith.constant 0 : index
    %8 = vector.load %arg4[%c0_6, %c0_7] : memref<120x84xf32, #tpu.memory_space<vmem>>, vector<120x84xf32>
    %cst_8 = arith.constant dense<0.000000e+00> : vector<8x84xf32>
    %9 = tpu.matmul %7, %8, %cst_8 {dimension_numbers = #tpu.dot_dimension_numbers<[1], [0], [0], [1], [0, 0, 1, 1], [], []>} : vector<8x120xf32>, vector<120x84xf32>, vector<8x84xf32> -> vector<8x84xf32>
    %c0_9 = arith.constant 0 : index
    %c0_10 = arith.constant 0 : index
    %10 = vector.load %arg5[%c0_9, %c0_10] : memref<1x84xf32, #tpu.memory_space<vmem>>, vector<1x84xf32>
    %11 = vector.broadcast %10 : vector<1x84xf32> to vector<8x84xf32>
    %12 = arith.addf %9, %11 : vector<8x84xf32>
    %cst_11 = arith.constant 0.000000e+00 : f32
    %13 = vector.broadcast %cst_11 : f32 to vector<8x84xf32>
    %14 = arith.maximumf %12, %13 : vector<8x84xf32>
    %c0_12 = arith.constant 0 : index
    %c0_13 = arith.constant 0 : index
    %15 = vector.load %arg6[%c0_12, %c0_13] : memref<84x10xf32, #tpu.memory_space<vmem>>, vector<84x10xf32>
    %cst_14 = arith.constant dense<0.000000e+00> : vector<8x10xf32>
    %16 = tpu.matmul %14, %15, %cst_14 {dimension_numbers = #tpu.dot_dimension_numbers<[1], [0], [0], [1], [0, 0, 1, 1], [], []>} : vector<8x84xf32>, vector<84x10xf32>, vector<8x10xf32> -> vector<8x10xf32>
    %c0_15 = arith.constant 0 : index
    %c0_16 = arith.constant 0 : index
    %17 = vector.load %arg7[%c0_15, %c0_16] : memref<1x10xf32, #tpu.memory_space<vmem>>, vector<1x10xf32>
    %18 = vector.broadcast %17 : vector<1x10xf32> to vector<8x10xf32>
    %19 = arith.addf %16, %18 : vector<8x10xf32>
    %c0_17 = arith.constant 0 : index
    %c0_18 = arith.constant 0 : index
    %20 = vector.load %arg8[%c0_17, %c0_18] : memref<8x10xf32, #tpu.memory_space<vmem>>, vector<8x10xf32>
    tpu.vector_store %arg8[%c0_17, %c0_18], %19 {strides = array<i32>} : memref<8x10xf32, #tpu.memory_space<vmem>>, vector<8x10xf32>,
    return
  }
  func.func @transform_0(%arg0: i32) -> (i32, i32) {
    %c0_i32 = arith.constant 0 : i32
    %c0_i32_0 = arith.constant 0 : i32
    return %arg0, %c0_i32 : i32, i32
  }
  func.func @transform_1(%arg0: i32) -> (i32, i32) {
    %c0_i32 = arith.constant 0 : i32
    %c0_i32_0 = arith.constant 0 : i32
    %c0_i32_1 = arith.constant 0 : i32
    return %c0_i32, %c0_i32_0 : i32, i32
  }
  func.func @transform_2(%arg0: i32) -> (i32, i32) {
    %c0_i32 = arith.constant 0 : i32
    %c0_i32_0 = arith.constant 0 : i32
    %c0_i32_1 = arith.constant 0 : i32
    return %c0_i32, %c0_i32_0 : i32, i32
  }
  func.func @transform_3(%arg0: i32) -> (i32, i32) {
    %c0_i32 = arith.constant 0 : i32
    %c0_i32_0 = arith.constant 0 : i32
    %c0_i32_1 = arith.constant 0 : i32
    return %c0_i32, %c0_i32_0 : i32, i32
  }
  func.func @transform_4(%arg0: i32) -> (i32, i32) {
    %c0_i32 = arith.constant 0 : i32
    %c0_i32_0 = arith.constant 0 : i32
    %c0_i32_1 = arith.constant 0 : i32
    return %c0_i32, %c0_i32_0 : i32, i32
  }
  func.func @transform_5(%arg0: i32) -> (i32, i32) {
    %c0_i32 = arith.constant 0 : i32
    %c0_i32_0 = arith.constant 0 : i32
    %c0_i32_1 = arith.constant 0 : i32
    return %c0_i32, %c0_i32_0 : i32, i32
  }
  func.func @transform_6(%arg0: i32) -> (i32, i32) {
    %c0_i32 = arith.constant 0 : i32
    %c0_i32_0 = arith.constant 0 : i32
    %c0_i32_1 = arith.constant 0 : i32
    return %c0_i32, %c0_i32_0 : i32, i32
  }
  func.func @transform_7(%arg0: i32) -> (i32, i32) {
    %c0_i32 = arith.constant 0 : i32
    %c0_i32_0 = arith.constant 0 : i32
    return %arg0, %c0_i32 : i32, i32
  }
}

</mosaic_0001>

<bundles_post_ra>
// kernel: lenet_forward.3
= control target key start
LH: loop header
LB: loop body
LE: loop exit
PB: predicated region body
PF: predicated region fallthrough
CT: control target
= control target key end

     0   :  { %s1844_s12 = smov 0   ;;  %s1846_s13 = smov 0   ;;  %s2414_s0 = inlined_call_operand.vmem [shape: f32[4,400,75], index: 0, kind: input, shape index: {}]   ;;  %s2415_s1 = inlined_call_operand.vmem [shape: f32[75,16], index: 1, kind: input, shape index: {}]   ;;  %s2416_s2 = inlined_call_operand.vmem [shape: f32[1,16], index: 2, kind: input, shape index: {}]   ;;  %s2417_s3 = inlined_call_operand.vmem [shape: f32[400,16], index: 3, kind: output, shape index: {}]  }
   0x1   :  { %s1848_s14 = smov 0  }
   0x2 LB: > { %s1557_s15 = sadd.s32 4294967295, %s1822_s14   ;;  %s1861_s16 = sadd.s32 1, %s1822_s14   ;;  %s1822_s14 = sphi %s1848_s14, %s2420_s14   ;;  %s1818_s13 = sphi %s1846_s13, %s2419_s13   ;;  %s1814_s12 = sphi %s1844_s12, %s2418_s12  }
   0x3   : > { %s17_s17 = ssub.s32 %s1822_s14, %s1861_s16  ;;  %s20_s18 = sadd.s32 1, %s1818_s13 }
   0x4   : > { %p18_p0 = scmp.eq.s32.totalorder %s17_s17, 0  ;;  %p27_p1 = scmp.ne.s32.totalorder %s1818_s13, %s1814_s12 }
   0x5   : > { %p28_p2 = scmp.eq.s32.totalorder %s1822_s14, 0  ;;  %p1560_p4 = scmp.ge.s32.totalorder %s1822_s14, 2 }
   0x6   : > { %s1870_s19 = scalar_select %p18_p0, %s1818_s13, %s20_s18  }
   0x7   : > { %p29_p3 = por %p28_p2, %p27_p1  ;;  %127 = sbr.rel (%p1560_p4) target bundleno = 117 (0x75), region = 24 }
   0xc   : > { %130 = sbr.rel (!%p29_p3) target bundleno = 117 (0x75), region = 28  ;;  %s132_s20 = sand.u32 (%p29_p3), 1, %s1818_s13  }
   0xd   : > { %s1742_s21 = smul.u32 (%p29_p3), 200, %s1822_s14 }
   0xe   : > { %s1773_s22 = smul.u32 (%p29_p3), 800, %s132_s20 }
   0xf   : > { %s1878_s25 = scalar_lea.vmem (%p29_p3), %s2414_s0, %s1742_s21 }
  0x10   : > { %v364_v0 = vld [vmem:[%s1878_s25] sm:$0xff] (%p29_p3)  ;;  %v366_v1 = vld [vmem:[%s1878_s25 + $0x8] sm:$0xff] (%p29_p3)  ;;  %v368_v2 = vld [vmem:[%s1878_s25 + $0x10] sm:$0xff] (%p29_p3)  ;;  %s1883_s26 = scalar_lea.vmem (%p29_p3), [#allocation2], %s1773_s22 }
  0x11   : > { %365 = vst [vmem:[%s1883_s26] sm:$0xff] %v364_v0  ;;  %v370_v3 = vld [vmem:[%s1878_s25 + $0x18] sm:$0xff]  ;;  %v372_v4 = vld [vmem:[%s1878_s25 + $0x20] sm:$0xff]  ;;  %v374_v5 = vld [vmem:[%s1878_s25 + $0x28] sm:$0xff] }
  0x12   : > { %367 = vst [vmem:[%s1883_s26 + $0x8] sm:$0xff] %v366_v1  ;;  %v376_v6 = vld [vmem:[%s1878_s25 + $0x30] sm:$0xff]  ;;  %v378_v7 = vld [vmem:[%s1878_s25 + $0x38] sm:$0xff]  ;;  %v380_v8 = vld [vmem:[%s1878_s25 + $0x40] sm:$0xff] }
  0x13   : > { %369 = vst [vmem:[%s1883_s26 + $0x10] sm:$0xff] %v368_v2  ;;  %v382_v9 = vld [vmem:[%s1878_s25 + $0x48] sm:$0xff]  ;;  %v384_v10 = vld [vmem:[%s1878_s25 + $0x50] sm:$0xff]  ;;  %v386_v11 = vld [vmem:[%s1878_s25 + $0x58] sm:$0xff] }
  0x14   : > { %371 = vst [vmem:[%s1883_s26 + $0x18] sm:$0xff] %v370_v3  ;;  %v388_v12 = vld [vmem:[%s1878_s25 + $0x60] sm:$0xff]  ;;  %v390_v13 = vld [vmem:[%s1878_s25 + $0x68] sm:$0xff]  ;;  %v392_v14 = vld [vmem:[%s1878_s25 + $0x70] sm:$0xff] }
  0x15   : > { %373 = vst [vmem:[%s1883_s26 + $0x20] sm:$0xff] %v372_v4  ;;  %v394_v15 = vld [vmem:[%s1878_s25 + $0x78] sm:$0xff]  ;;  %v396_v16 = vld [vmem:[%s1878_s25 + $0x80] sm:$0xff]  ;;  %v398_v17 = vld [vmem:[%s1878_s25 + $0x88] sm:$0xff] }
  0x16   : > { %375 = vst [vmem:[%s1883_s26 + $0x28] sm:$0xff] %v374_v5  ;;  %v400_v18 = vld [vmem:[%s1878_s25 + $0x90] sm:$0xff]  ;;  %v402_v19 = vld [vmem:[%s1878_s25 + $0x98] sm:$0xff]  ;;  %v404_v20 = vld [vmem:[%s1878_s25 + $0xa0] sm:$0xff] }
  0x17   : > { %377 = vst [vmem:[%s1883_s26 + $0x30] sm:$0xff] %v376_v6  ;;  %v406_v21 = vld [vmem:[%s1878_s25 + $0xa8] sm:$0xff]  ;;  %v408_v22 = vld [vmem:[%s1878_s25 + $0xb0] sm:$0xff]  ;;  %v410_v23 = vld [vmem:[%s1878_s25 + $0xb8] sm:$0xff] }
  0x18   : > { %379 = vst [vmem:[%s1883_s26 + $0x38] sm:$0xff] %v378_v7  ;;  %v412_v24 = vld [vmem:[%s1878_s25 + $0xc0] sm:$0xff]  ;;  %v414_v25 = vld [vmem:[%s1878_s25 + $0x190] sm:$0xff]  ;;  %v416_v26 = vld [vmem:[%s1878_s25 + $0x198] sm:$0xff] }
  0x19   : > { %381 = vst [vmem:[%s1883_s26 + $0x40] sm:$0xff] %v380_v8  ;;  %v418_v27 = vld [vmem:[%s1878_s25 + $0x1a0] sm:$0xff]  ;;  %v420_v28 = vld [vmem:[%s1878_s25 + $0x1a8] sm:$0xff]  ;;  %v422_v29 = vld [vmem:[%s1878_s25 + $0x1b0] sm:$0xff] }
  0x1a   : > { %383 = vst [vmem:[%s1883_s26 + $0x48] sm:$0xff] %v382_v9  ;;  %v424_v30 = vld [vmem:[%s1878_s25 + $0x1b8] sm:$0xff]  ;;  %v426_v31 = vld [vmem:[%s1878_s25 + $0x1c0] sm:$0xff]  ;;  %v428_v32 = vld [vmem:[%s1878_s25 + $0x1c8] sm:$0xff] }
  0x1b   : > { %385 = vst [vmem:[%s1883_s26 + $0x50] sm:$0xff] %v384_v10  ;;  %v430_v33 = vld [vmem:[%s1878_s25 + $0x1d0] sm:$0xff]  ;;  %v432_v34 = vld [vmem:[%s1878_s25 + $0x1d8] sm:$0xff]  ;;  %v434_v35 = vld [vmem:[%s1878_s25 + $0x1e0] sm:$0xff] }
  0x1c   : > { %387 = vst [vmem:[%s1883_s26 + $0x58] sm:$0xff] %v386_v11  ;;  %v436_v36 = vld [vmem:[%s1878_s25 + $0x1e8] sm:$0xff]  ;;  %v438_v37 = vld [vmem:[%s1878_s25 + $0x1f0] sm:$0xff]  ;;  %v440_v38 = vld [vmem:[%s1878_s25 + $0x1f8] sm:$0xff] }
  0x1d   : > { %389 = vst [vmem:[%s1883_s26 + $0x60] sm:$0xff] %v388_v12  ;;  %v442_v39 = vld [vmem:[%s1878_s25 + $0x200] sm:$0xff]  ;;  %v444_v40 = vld [vmem:[%s1878_s25 + $0x208] sm:$0xff]  ;;  %v446_v41 = vld [vmem:[%s1878_s25 + $0x210] sm:$0xff] }
  0x1e   : > { %391 = vst [vmem:[%s1883_s26 + $0x68] sm:$0xff] %v390_v13  ;;  %v448_v42 = vld [vmem:[%s1878_s25 + $0x218] sm:$0xff]  ;;  %v450_v43 = vld [vmem:[%s1878_s25 + $0x220] sm:$0xff]  ;;  %v452_v44 = vld [vmem:[%s1878_s25 + $0x228] sm:$0xff] }
  0x1f   : > { %393 = vst [vmem:[%s1883_s26 + $0x70] sm:$0xff] %v392_v14  ;;  %v454_v45 = vld [vmem:[%s1878_s25 + $0x230] sm:$0xff]  ;;  %v456_v46 = vld [vmem:[%s1878_s25 + $0x238] sm:$0xff]  ;;  %v458_v47 = vld [vmem:[%s1878_s25 + $0x240] sm:$0xff] }
  0x20   : > { %395 = vst [vmem:[%s1883_s26 + $0x78] sm:$0xff] %v394_v15  ;;  %v460_v48 = vld [vmem:[%s1878_s25 + $0x248] sm:$0xff]  ;;  %v462_v49 = vld [vmem:[%s1878_s25 + $0x250] sm:$0xff]  ;;  %v464_v50 = vld [vmem:[%s1878_s25 + $0x320] sm:$0xff] }
  0x21   : > { %397 = vst [vmem:[%s1883_s26 + $0x80] sm:$0xff] %v396_v16  ;;  %v466_v51 = vld [vmem:[%s1878_s25 + $0x328] sm:$0xff]  ;;  %v468_v52 = vld [vmem:[%s1878_s25 + $0x330] sm:$0xff]  ;;  %v470_v53 = vld [vmem:[%s1878_s25 + $0x338] sm:$0xff] }
  0x22   : > { %399 = vst [vmem:[%s1883_s26 + $0x88] sm:$0xff] %v398_v17  ;;  %v472_v54 = vld [vmem:[%s1878_s25 + $0x340] sm:$0xff]  ;;  %v474_v55 = vld [vmem:[%s1878_s25 + $0x348] sm:$0xff]  ;;  %v476_v56 = vld [vmem:[%s1878_s25 + $0x350] sm:$0xff] }
  0x23   : > { %401 = vst [vmem:[%s1883_s26 + $0x90] sm:$0xff] %v400_v18  ;;  %v478_v57 = vld [vmem:[%s1878_s25 + $0x358] sm:$0xff]  ;;  %v480_v58 = vld [vmem:[%s1878_s25 + $0x360] sm:$0xff]  ;;  %v482_v59 = vld [vmem:[%s1878_s25 + $0x368] sm:$0xff] }
  0x24   : > { %403 = vst [vmem:[%s1883_s26 + $0x98] sm:$0xff] %v402_v19  ;;  %v484_v60 = vld [vmem:[%s1878_s25 + $0x370] sm:$0xff]  ;;  %v486_v61 = vld [vmem:[%s1878_s25 + $0x378] sm:$0xff]  ;;  %v488_v62 = vld [vmem:[%s1878_s25 + $0x380] sm:$0xff] }
  0x25   : > { %405 = vst [vmem:[%s1883_s26 + $0xa0] sm:$0xff] %v404_v20  ;;  %v490_v63 = vld [vmem:[%s1878_s25 + $0x388] sm:$0xff]  ;;  %v492_v0 = vld [vmem:[%s1878_s25 + $0x390] sm:$0xff]  ;;  %v494_v1 = vld [vmem:[%s1878_s25 + $0x398] sm:$0xff] }
  0x26   : > { %407 = vst [vmem:[%s1883_s26 + $0xa8] sm:$0xff] %v406_v21  ;;  %v496_v2 = vld [vmem:[%s1878_s25 + $0x3a0] sm:$0xff]  ;;  %v498_v3 = vld [vmem:[%s1878_s25 + $0x3a8] sm:$0xff]  ;;  %v500_v4 = vld [vmem:[%s1878_s25 + $0x3b0] sm:$0xff] }
  0x27   : > { %409 = vst [vmem:[%s1883_s26 + $0xb0] sm:$0xff] %v408_v22  ;;  %v502_v5 = vld [vmem:[%s1878_s25 + $0x3b8] sm:$0xff]  ;;  %v504_v6 = vld [vmem:[%s1878_s25 + $0x3c0] sm:$0xff]  ;;  %v506_v7 = vld [vmem:[%s1878_s25 + $0x3c8] sm:$0xff] }
  0x28   : > { %411 = vst [vmem:[%s1883_s26 + $0xb8] sm:$0xff] %v410_v23  ;;  %v508_v8 = vld [vmem:[%s1878_s25 + $0x3d0] sm:$0xff]  ;;  %v510_v9 = vld [vmem:[%s1878_s25 + $0x3d8] sm:$0xff]  ;;  %v512_v10 = vld [vmem:[%s1878_s25 + $0x3e0] sm:$0xff] }
  0x29   : > { %413 = vst [vmem:[%s1883_s26 + $0xc0] sm:$0xff] %v412_v24  ;;  %v514_v11 = vld [vmem:[%s1878_s25 + $0x4b0] sm:$0xff]  ;;  %v516_v12 = vld [vmem:[%s1878_s25 + $0x4b8] sm:$0xff]  ;;  %v518_v13 = vld [vmem:[%s1878_s25 + $0x4c0] sm:$0xff] }
  0x2a   : > { %415 = vst [vmem:[%s1883_s26 + $0xc8] sm:$0xff] %v414_v25  ;;  %v520_v14 = vld [vmem:[%s1878_s25 + $0x4c8] sm:$0xff]  ;;  %v522_v15 = vld [vmem:[%s1878_s25 + $0x4d0] sm:$0xff]  ;;  %v524_v16 = vld [vmem:[%s1878_s25 + $0x4d8] sm:$0xff] }
  0x2b   : > { %417 = vst [vmem:[%s1883_s26 + $0xd0] sm:$0xff] %v416_v26  ;;  %v526_v17 = vld [vmem:[%s1878_s25 + $0x4e0] sm:$0xff]  ;;  %v528_v18 = vld [vmem:[%s1878_s25 + $0x4e8] sm:$0xff]  ;;  %v530_v19 = vld [vmem:[%s1878_s25 + $0x4f0] sm:$0xff] }
  0x2c   : > { %419 = vst [vmem:[%s1883_s26 + $0xd8] sm:$0xff] %v418_v27  ;;  %v532_v20 = vld [vmem:[%s1878_s25 + $0x4f8] sm:$0xff]  ;;  %v534_v21 = vld [vmem:[%s1878_s25 + $0x500] sm:$0xff]  ;;  %v536_v22 = vld [vmem:[%s1878_s25 + $0x508] sm:$0xff] }
  0x2d   : > { %421 = vst [vmem:[%s1883_s26 + $0xe0] sm:$0xff] %v420_v28  ;;  %v538_v23 = vld [vmem:[%s1878_s25 + $0x510] sm:$0xff]  ;;  %v540_v24 = vld [vmem:[%s1878_s25 + $0x518] sm:$0xff]  ;;  %v542_v25 = vld [vmem:[%s1878_s25 + $0x520] sm:$0xff] }
  0x2e   : > { %423 = vst [vmem:[%s1883_s26 + $0xe8] sm:$0xff] %v422_v29  ;;  %v544_v26 = vld [vmem:[%s1878_s25 + $0x528] sm:$0xff]  ;;  %v546_v27 = vld [vmem:[%s1878_s25 + $0x530] sm:$0xff]  ;;  %v548_v28 = vld [vmem:[%s1878_s25 + $0x538] sm:$0xff] }
  0x2f   : > { %425 = vst [vmem:[%s1883_s26 + $0xf0] sm:$0xff] %v424_v30  ;;  %v550_v29 = vld [vmem:[%s1878_s25 + $0x540] sm:$0xff]  ;;  %v552_v30 = vld [vmem:[%s1878_s25 + $0x548] sm:$0xff] }
  0x30   : > { %427 = vst [vmem:[%s1883_s26 + $0xf8] sm:$0xff] %v426_v31  ;;  %v554_v31 = vld [vmem:[%s1878_s25 + $0x550] sm:$0xff] }
  0x31   : > { %429 = vst [vmem:[%s1883_s26 + $0x100] sm:$0xff] %v428_v32  ;;  %v556_v32 = vld [vmem:[%s1878_s25 + $0x558] sm:$0xff] }
  0x32   : > { %431 = vst [vmem:[%s1883_s26 + $0x108] sm:$0xff] %v430_v33  ;;  %v558_v33 = vld [vmem:[%s1878_s25 + $0x560] sm:$0xff] }
  0x33   : > { %433 = vst [vmem:[%s1883_s26 + $0x110] sm:$0xff] %v432_v34  ;;  %v560_v34 = vld [vmem:[%s1878_s25 + $0x568] sm:$0xff] }
  0x34   : > { %435 = vst [vmem:[%s1883_s26 + $0x118] sm:$0xff] %v434_v35  ;;  %v562_v35 = vld [vmem:[%s1878_s25 + $0x570] sm:$0xff] }
  0x35   : > { %437 = vst [vmem:[%s1883_s26 + $0x120] sm:$0xff] %v436_v36 }
  0x36   : > { %439 = vst [vmem:[%s1883_s26 + $0x128] sm:$0xff] %v438_v37 }
  0x37   : > { %441 = vst [vmem:[%s1883_s26 + $0x130] sm:$0xff] %v440_v38 }
  0x38   : > { %443 = vst [vmem:[%s1883_s26 + $0x138] sm:$0xff] %v442_v39 }
  0x39   : > { %445 = vst [vmem:[%s1883_s26 + $0x140] sm:$0xff] %v444_v40 }
  0x3a   : > { %447 = vst [vmem:[%s1883_s26 + $0x148] sm:$0xff] %v446_v41 }
  0x3b   : > { %449 = vst [vmem:[%s1883_s26 + $0x150] sm:$0xff] %v448_v42 }
  0x3c   : > { %451 = vst [vmem:[%s1883_s26 + $0x158] sm:$0xff] %v450_v43 }
  0x3d   : > { %453 = vst [vmem:[%s1883_s26 + $0x160] sm:$0xff] %v452_v44 }
  0x3e   : > { %455 = vst [vmem:[%s1883_s26 + $0x168] sm:$0xff] %v454_v45 }
  0x3f   : > { %457 = vst [vmem:[%s1883_s26 + $0x170] sm:$0xff] %v456_v46 }
  0x40   : > { %459 = vst [vmem:[%s1883_s26 + $0x178] sm:$0xff] %v458_v47 }
  0x41   : > { %461 = vst [vmem:[%s1883_s26 + $0x180] sm:$0xff] %v460_v48 }
  0x42   : > { %463 = vst [vmem:[%s1883_s26 + $0x188] sm:$0xff] %v462_v49 }
  0x43   : > { %465 = vst [vmem:[%s1883_s26 + $0x190] sm:$0xff] %v464_v50 }
  0x44   : > { %467 = vst [vmem:[%s1883_s26 + $0x198] sm:$0xff] %v466_v51 }
  0x45   : > { %469 = vst [vmem:[%s1883_s26 + $0x1a0] sm:$0xff] %v468_v52 }
  0x46   : > { %471 = vst [vmem:[%s1883_s26 + $0x1a8] sm:$0xff] %v470_v53 }
  0x47   : > { %473 = vst [vmem:[%s1883_s26 + $0x1b0] sm:$0xff] %v472_v54 }
  0x48   : > { %475 = vst [vmem:[%s1883_s26 + $0x1b8] sm:$0xff] %v474_v55 }
  0x49   : > { %477 = vst [vmem:[%s1883_s26 + $0x1c0] sm:$0xff] %v476_v56 }
  0x4a   : > { %479 = vst [vmem:[%s1883_s26 + $0x1c8] sm:$0xff] %v478_v57 }
  0x4b   : > { %481 = vst [vmem:[%s1883_s26 + $0x1d0] sm:$0xff] %v480_v58 }
  0x4c   : > { %483 = vst [vmem:[%s1883_s26 + $0x1d8] sm:$0xff] %v482_v59 }
  0x4d   : > { %485 = vst [vmem:[%s1883_s26 + $0x1e0] sm:$0xff] %v484_v60 }
  0x4e   : > { %487 = vst [vmem:[%s1883_s26 + $0x1e8] sm:$0xff] %v486_v61 }
  0x4f   : > { %489 = vst [vmem:[%s1883_s26 + $0x1f0] sm:$0xff] %v488_v62 }
  0x50   : > { %491 = vst [vmem:[%s1883_s26 + $0x1f8] sm:$0xff] %v490_v63 }
  0x51   : > { %493 = vst [vmem:[%s1883_s26 + $0x200] sm:$0xff] %v492_v0 }
  0x52   : > { %495 = vst [vmem:[%s1883_s26 + $0x208] sm:$0xff] %v494_v1 }
  0x53   : > { %497 = vst [vmem:[%s1883_s26 + $0x210] sm:$0xff] %v496_v2 }
  0x54   : > { %499 = vst [vmem:[%s1883_s26 + $0x218] sm:$0xff] %v498_v3 }
  0x55   : > { %501 = vst [vmem:[%s1883_s26 + $0x220] sm:$0xff] %v500_v4 }
  0x56   : > { %503 = vst [vmem:[%s1883_s26 + $0x228] sm:$0xff] %v502_v5 }
  0x57   : > { %505 = vst [vmem:[%s1883_s26 + $0x230] sm:$0xff] %v504_v6 }
  0x58   : > { %507 = vst [vmem:[%s1883_s26 + $0x238] sm:$0xff] %v506_v7 }
  0x59   : > { %509 = vst [vmem:[%s1883_s26 + $0x240] sm:$0xff] %v508_v8 }
  0x5a   : > { %511 = vst [vmem:[%s1883_s26 + $0x248] sm:$0xff] %v510_v9 }
  0x5b   : > { %513 = vst [vmem:[%s1883_s26 + $0x250] sm:$0xff] %v512_v10 }
  0x5c   : > { %515 = vst [vmem:[%s1883_s26 + $0x258] sm:$0xff] %v514_v11 }
  0x5d   : > { %517 = vst [vmem:[%s1883_s26 + $0x260] sm:$0xff] %v516_v12 }
  0x5e   : > { %519 = vst [vmem:[%s1883_s26 + $0x268] sm:$0xff] %v518_v13 }
  0x5f   : > { %521 = vst [vmem:[%s1883_s26 + $0x270] sm:$0xff] %v520_v14 }
  0x60   : > { %523 = vst [vmem:[%s1883_s26 + $0x278] sm:$0xff] %v522_v15 }
  0x61   : > { %525 = vst [vmem:[%s1883_s26 + $0x280] sm:$0xff] %v524_v16 }
  0x62   : > { %527 = vst [vmem:[%s1883_s26 + $0x288] sm:$0xff] %v526_v17 }
  0x63   : > { %529 = vst [vmem:[%s1883_s26 + $0x290] sm:$0xff] %v528_v18 }
  0x64   : > { %531 = vst [vmem:[%s1883_s26 + $0x298] sm:$0xff] %v530_v19 }
  0x65   : > { %533 = vst [vmem:[%s1883_s26 + $0x2a0] sm:$0xff] %v532_v20 }
  0x66   : > { %535 = vst [vmem:[%s1883_s26 + $0x2a8] sm:$0xff] %v534_v21 }
  0x67   : > { %537 = vst [vmem:[%s1883_s26 + $0x2b0] sm:$0xff] %v536_v22 }
  0x68   : > { %539 = vst [vmem:[%s1883_s26 + $0x2b8] sm:$0xff] %v538_v23 }
  0x69   : > { %541 = vst [vmem:[%s1883_s26 + $0x2c0] sm:$0xff] %v540_v24 }
  0x6a   : > { %543 = vst [vmem:[%s1883_s26 + $0x2c8] sm:$0xff] %v542_v25 }
  0x6b   : > { %545 = vst [vmem:[%s1883_s26 + $0x2d0] sm:$0xff] %v544_v26 }
  0x6c   : > { %547 = vst [vmem:[%s1883_s26 + $0x2d8] sm:$0xff] %v546_v27 }
  0x6d   : > { %549 = vst [vmem:[%s1883_s26 + $0x2e0] sm:$0xff] %v548_v28 }
  0x6e   : > { %551 = vst [vmem:[%s1883_s26 + $0x2e8] sm:$0xff] %v550_v29 }
  0x6f   : > { %553 = vst [vmem:[%s1883_s26 + $0x2f0] sm:$0xff] %v552_v30 }
  0x70   : > { %555 = vst [vmem:[%s1883_s26 + $0x2f8] sm:$0xff] %v554_v31 }
  0x71   : > { %557 = vst [vmem:[%s1883_s26 + $0x300] sm:$0xff] %v556_v32 }
  0x72   : > { %559 = vst [vmem:[%s1883_s26 + $0x308] sm:$0xff] %v558_v33 }
  0x73   : > { %561 = vst [vmem:[%s1883_s26 + $0x310] sm:$0xff] %v560_v34 }
  0x74   : > { %563 = vst [vmem:[%s1883_s26 + $0x318] sm:$0xff] %v562_v35 }
  0x75 PF: > { %p1562_p5 = scmp.ge.s32.totalorder %s1822_s14, 1  ;;  %p568_p6 = scmp.lt.s32.totalorder %s1822_s14, 3 }
  0x77   : > { %p569_p7 = pnand %p1562_p5, %p568_p6 }
  0x78   : > { %s575_s10 = sand.u32 (!%p569_p7), 1, %s1814_s12   ;;  %s599_s28 = smul.u32 (!%p569_p7), 25, %s1557_s15 }
  0x79   : > { %572 = sbr.rel (%p569_p7) target bundleno = 479 (0x1df), region = 66 }
  0x7a   : > { %s1774_s21 = smul.u32 (!%p569_p7), 800, %s575_s10  ;;  %p600_p8 = scmp.lt.s32.totalorder (!%p569_p7), %s599_s28, 49 }
  0x7c   : > { %s2115_s27 = scalar_lea.vmem (!%p569_p7), [#allocation2], %s1774_s21 }
  0x7e   : > { %v717_v36 = vld [vmem:[%s2415_s1 + $0x48] sm:$0x7]  ;;  %vm1019_vm0 = vcmask 1042432   ;;  %v716_v37 = vld [vmem:[%s2415_s1 + $0x40] sm:$0xff]  ;;  %v715_v38 = vld [vmem:[%s2415_s1 + $0x38] sm:$0xff]  ;;  %vm718_vm1 = vcmask 613376  }
  0x7f   : > { %1744 = vmatpush.msk.msra.mxu2 %vm1019_vm0, %v717_v36  ;;  %1745 = vmatpush.msk.msra.mxu3 %vm1019_vm0, %v717_v36  ;;  %v714_v39 = vld [vmem:[%s2415_s1 + $0x30] sm:$0xff]  ;;  %v713_v40 = vld [vmem:[%s2415_s1 + $0x28] sm:$0xff]  ;;  %v712_v41 = vld [vmem:[%s2415_s1 + $0x20] sm:$0xff]  ;;  %s2422_s28 = smov (!%p600_p8, %s599_s28), 49  ;;  %vm1469_vm2 = vcmask 130048  }
  0x80   : > { %1639 = vmatpush.msk.msra.mxu0 %vm1019_vm0, %v717_v36  ;;  %1743 = vmatpush.msk.msra.mxu1 %vm1019_vm0, %v717_v36  ;;  %v711_v42 = vld [vmem:[%s2415_s1 + $0x18] sm:$0xff]  ;;  %v710_v43 = vld [vmem:[%s2415_s1 + $0x10] sm:$0xff]  ;;  %v709_v44 = vld [vmem:[%s2415_s1 + $0x8] sm:$0xff]  ;;  %s1563_s29 = sshll.u32 %s2422_s28, 3 }
  0x81   : > { %1747 = vmatpush.msra.mxu2 %v716_v37  ;;  %1748 = vmatpush.msra.mxu3 %v716_v37  ;;  %v708_v45 = vld [vmem:[%s2415_s1] sm:$0xff]  ;;  %v1589_v46 = vld [vmem:[%s2115_s27 + $0x190] sm:$0xff]  ;;  %v1614_v47 = vld [vmem:[%s2115_s27 + $0x258] sm:$0xff]  ;;  %s2270_s5 = scalar_lea.vmem %s2417_s3, %s1563_s29 }
  0x82   : > { %1030 = vmatpush.msra.mxu0 %v716_v37  ;;  %1746 = vmatpush.msra.mxu1 %v716_v37  ;;  %v605_v48 = vld [vmem:[%s2115_s27] sm:$0xff]  ;;  %v1564_v49 = vld [vmem:[%s2115_s27 + $0xc8] sm:$0xff]  ;;  %v1590_v50 = vld [vmem:[%s2115_s27 + $0x198] sm:$0xff] }
  0x83   : > { %1750 = vmatpush.msra.mxu2 %v715_v38  ;;  %1751 = vmatpush.msra.mxu3 %v715_v38  ;;  %v1615_v51 = vld [vmem:[%s2115_s27 + $0x260] sm:$0xff]  ;;  %v606_v52 = vld [vmem:[%s2115_s27 + $0x8] sm:$0xff]  ;;  %v1565_v53 = vld [vmem:[%s2115_s27 + $0xd0] sm:$0xff] }
  0x84   : > { %1031 = vmatpush.msra.mxu0 %v715_v38  ;;  %1749 = vmatpush.msra.mxu1 %v715_v38  ;;  %v1591_v54 = vld [vmem:[%s2115_s27 + $0x1a0] sm:$0xff]  ;;  %v1616_v55 = vld [vmem:[%s2115_s27 + $0x268] sm:$0xff]  ;;  %v607_v56 = vld [vmem:[%s2115_s27 + $0x10] sm:$0xff] }
  0x85   : > { %1753 = vmatpush.msra.mxu2 %v714_v39  ;;  %1754 = vmatpush.msra.mxu3 %v714_v39  ;;  %v1566_v57 = vld [vmem:[%s2115_s27 + $0xd8] sm:$0xff]  ;;  %v1592_v58 = vld [vmem:[%s2115_s27 + $0x1a8] sm:$0xff]  ;;  %v1617_v59 = vld [vmem:[%s2115_s27 + $0x270] sm:$0xff] }
  0x86   : > { %1032 = vmatpush.msra.mxu0 %v714_v39  ;;  %1752 = vmatpush.msra.mxu1 %v714_v39  ;;  %v608_v60 = vld [vmem:[%s2115_s27 + $0x18] sm:$0xff]  ;;  %v1567_v61 = vld [vmem:[%s2115_s27 + $0xe0] sm:$0xff]  ;;  %v1593_v62 = vld [vmem:[%s2115_s27 + $0x1b0] sm:$0xff] }
  0x87   : > { %1756 = vmatpush.msra.mxu2 %v713_v40  ;;  %1757 = vmatpush.msra.mxu3 %v713_v40  ;;  %v1618_v63 = vld [vmem:[%s2115_s27 + $0x278] sm:$0xff]  ;;  %v609_v0 = vld [vmem:[%s2115_s27 + $0x20] sm:$0xff]  ;;  %v1568_v1 = vld [vmem:[%s2115_s27 + $0xe8] sm:$0xff] }
  0x88   : > { %1033 = vmatpush.msra.mxu0 %v713_v40  ;;  %1755 = vmatpush.msra.mxu1 %v713_v40  ;;  %v1594_v2 = vld [vmem:[%s2115_s27 + $0x1b8] sm:$0xff]  ;;  %v1619_v3 = vld [vmem:[%s2115_s27 + $0x280] sm:$0xff]  ;;  %v610_v4 = vld [vmem:[%s2115_s27 + $0x28] sm:$0xff] }
  0x89   : > { %1759 = vmatpush.msra.mxu2 %v712_v41  ;;  %1760 = vmatpush.msra.mxu3 %v712_v41  ;;  %v1569_v5 = vld [vmem:[%s2115_s27 + $0xf0] sm:$0xff]  ;;  %v1595_v6 = vld [vmem:[%s2115_s27 + $0x1c0] sm:$0xff]  ;;  %v1620_v7 = vld [vmem:[%s2115_s27 + $0x288] sm:$0xff] }
  0x8a   : > { %1034 = vmatpush.msra.mxu0 %v712_v41  ;;  %1758 = vmatpush.msra.mxu1 %v712_v41  ;;  %v611_v8 = vld [vmem:[%s2115_s27 + $0x30] sm:$0xff]  ;;  %v1570_v9 = vld [vmem:[%s2115_s27 + $0xf8] sm:$0xff]  ;;  %v1596_v10 = vld [vmem:[%s2115_s27 + $0x1c8] sm:$0xff] }
  0x8b   : > { %1762 = vmatpush.msra.mxu2 %v711_v42  ;;  %1763 = vmatpush.msra.mxu3 %v711_v42  ;;  %v1621_v11 = vld [vmem:[%s2115_s27 + $0x290] sm:$0xff]  ;;  %v612_v12 = vld [vmem:[%s2115_s27 + $0x38] sm:$0xff]  ;;  %v1571_v13 = vld [vmem:[%s2115_s27 + $0x100] sm:$0xff] }
  0x8c   : > { %1035 = vmatpush.msra.mxu0 %v711_v42  ;;  %1761 = vmatpush.msra.mxu1 %v711_v42  ;;  %v1597_v14 = vld [vmem:[%s2115_s27 + $0x1d0] sm:$0xff]  ;;  %v1622_v15 = vld [vmem:[%s2115_s27 + $0x298] sm:$0xff]  ;;  %v613_v16 = vld [vmem:[%s2115_s27 + $0x40] sm:$0xff] }
  0x8d   : > { %1765 = vmatpush.msra.mxu2 %v710_v43  ;;  %1766 = vmatpush.msra.mxu3 %v710_v43  ;;  %v1572_v17 = vld [vmem:[%s2115_s27 + $0x108] sm:$0xff]  ;;  %v1598_v18 = vld [vmem:[%s2115_s27 + $0x1d8] sm:$0xff]  ;;  %v1623_v19 = vld [vmem:[%s2115_s27 + $0x2a0] sm:$0xff] }
  0x8e   : > { %1036 = vmatpush.msra.mxu0 %v710_v43  ;;  %1764 = vmatpush.msra.mxu1 %v710_v43  ;;  %v614_v20 = vld [vmem:[%s2115_s27 + $0x48] sm:$0xff]  ;;  %v1573_v21 = vld [vmem:[%s2115_s27 + $0x110] sm:$0xff]  ;;  %v1599_v22 = vld [vmem:[%s2115_s27 + $0x1e0] sm:$0xff] }
  0x8f   : > { %1768 = vmatpush.msra.mxu2 %v709_v44  ;;  %1769 = vmatpush.msra.mxu3 %v709_v44  ;;  %v1624_v23 = vld [vmem:[%s2115_s27 + $0x2a8] sm:$0xff]  ;;  %v615_v24 = vld [vmem:[%s2115_s27 + $0x50] sm:$0xff]  ;;  %v1574_v25 = vld [vmem:[%s2115_s27 + $0x118] sm:$0xff] }
  0x90   : > { %1037 = vmatpush.msra.mxu0 %v709_v44  ;;  %1767 = vmatpush.msra.mxu1 %v709_v44  ;;  %v1600_v26 = vld [vmem:[%s2115_s27 + $0x1e8] sm:$0xff]  ;;  %v1625_v27 = vld [vmem:[%s2115_s27 + $0x2b0] sm:$0xff]  ;;  %v616_v28 = vld [vmem:[%s2115_s27 + $0x58] sm:$0xff] }
  0x91   : > { %1771 = vmatpush.msra.mxu2 %v708_v45  ;;  %1772 = vmatpush.msra.mxu3 %v708_v45  ;;  %v1575_v29 = vld [vmem:[%s2115_s27 + $0x120] sm:$0xff]  ;;  %v1601_v30 = vld [vmem:[%s2115_s27 + $0x1f0] sm:$0xff]  ;;  %v1626_v31 = vld [vmem:[%s2115_s27 + $0x2b8] sm:$0xff] }
  0x92   : > { %1690 = vmatmul.msk.f32.vlgmr.msra.gmra.mxu2 %vm718_vm1, %v1589_v46  ;;  %1715 = vmatmul.msk.f32.vlgmr.msra.gmra.mxu3 %vm718_vm1, %v1614_v47  ;;  %v617_v32 = vld [vmem:[%s2115_s27 + $0x60] sm:$0xff]  ;;  %v1576_v33 = vld [vmem:[%s2115_s27 + $0x128] sm:$0xff]  ;;  %v1602_v34 = vld [vmem:[%s2115_s27 + $0x1f8] sm:$0xff] }
  0x93   : > { %1038 = vmatpush.msra.mxu0 %v708_v45  ;;  %1770 = vmatpush.msra.mxu1 %v708_v45  ;;  %v1627_v35 = vld [vmem:[%s2115_s27 + $0x2c0] sm:$0xff]  ;;  %v618_v36 = vld [vmem:[%s2115_s27 + $0x68] sm:$0xff]  ;;  %v1577_v37 = vld [vmem:[%s2115_s27 + $0x130] sm:$0xff] }
  0x94   : > { %1640 = vmatmul.msk.f32.vlgmr.msra.gmra.mxu0 %vm718_vm1, %v605_v48  ;;  %1665 = vmatmul.msk.f32.vlgmr.msra.gmra.mxu1 %vm718_vm1, %v1564_v49  ;;  %v1603_v38 = vld [vmem:[%s2115_s27 + $0x200] sm:$0xff]  ;;  %v1628_v39 = vld [vmem:[%s2115_s27 + $0x2c8] sm:$0xff]  ;;  %v619_v40 = vld [vmem:[%s2115_s27 + $0x70] sm:$0xff] }
  0x95   : > { %v1578_v41 = vld [vmem:[%s2115_s27 + $0x138] sm:$0xff]  ;;  %v1604_v42 = vld [vmem:[%s2115_s27 + $0x208] sm:$0xff]  ;;  %v1629_v43 = vld [vmem:[%s2115_s27 + $0x2d0] sm:$0xff] }
  0x96   : > { %v620_v44 = vld [vmem:[%s2115_s27 + $0x78] sm:$0xff]  ;;  %v1579_v45 = vld [vmem:[%s2115_s27 + $0x140] sm:$0xff]  ;;  %v1605_v46 = vld [vmem:[%s2115_s27 + $0x210] sm:$0xff] }
  0x97   : > { %v1630_v47 = vld [vmem:[%s2115_s27 + $0x2d8] sm:$0xff] }
  0x9a   : > { %1691 = vmatmul.msk.f32.gmra.mxu2 %vm718_vm1, %v1590_v50  ;;  %1716 = vmatmul.msk.f32.gmra.mxu3 %vm718_vm1, %v1615_v51  ;;  %v621_v50 = vld [vmem:[%s2115_s27 + $0x80] sm:$0xff]  ;;  %v1580_v51 = vld [vmem:[%s2115_s27 + $0x148] sm:$0xff] }
  0x9c   : > { %1641 = vmatmul.msk.f32.gmra.mxu0 %vm718_vm1, %v606_v52  ;;  %1666 = vmatmul.msk.f32.gmra.mxu1 %vm718_vm1, %v1565_v53 }
  0xa2   : > { %1692 = vmatmul.msk.f32.gmra.mxu2 %vm718_vm1, %v1591_v54  ;;  %1717 = vmatmul.msk.f32.gmra.mxu3 %vm718_vm1, %v1616_v55 }
  0xa4   : > { %1642 = vmatmul.msk.f32.gmra.mxu0 %vm718_vm1, %v607_v56  ;;  %1667 = vmatmul.msk.f32.gmra.mxu1 %vm718_vm1, %v1566_v57  ;;  %v2258_v56 = vld [vmem:[%s2416_s2] ss:$0 sm:$0xff]  ;;  %v1606_v57 = vld [vmem:[%s2115_s27 + $0x218] sm:$0xff] }
  0xaa   : > { %1693 = vmatmul.msk.f32.gmra.mxu2 %vm718_vm1, %v1592_v58  ;;  %1718 = vmatmul.msk.f32.gmra.mxu3 %vm718_vm1, %v1617_v59  ;;  %v1631_v58 = vld [vmem:[%s2115_s27 + $0x2e0] sm:$0xff] }
  0xac   : > { %1643 = vmatmul.msk.f32.gmra.mxu0 %vm718_vm1, %v608_v60  ;;  %1668 = vmatmul.msk.f32.gmra.mxu1 %vm718_vm1, %v1567_v61 }
  0xb2   : > { %1694 = vmatmul.msk.f32.gmra.mxu2 %vm718_vm1, %v1593_v62  ;;  %1719 = vmatmul.msk.f32.gmra.mxu3 %vm718_vm1, %v1618_v63  ;;  %v622_v62 = vld [vmem:[%s2115_s27 + $0x88] sm:$0xff]  ;;  %v1581_v63 = vld [vmem:[%s2115_s27 + $0x150] sm:$0xff] }
  0xb4   : > { %1644 = vmatmul.msk.f32.gmra.mxu0 %vm718_vm1, %v609_v0  ;;  %1669 = vmatmul.msk.f32.gmra.mxu1 %vm718_vm1, %v1568_v1 }
  0xba   : > { %1695 = vmatmul.msk.f32.gmra.mxu2 %vm718_vm1, %v1594_v2  ;;  %1720 = vmatmul.msk.f32.gmra.mxu3 %vm718_vm1, %v1619_v3 }
  0xbc   : > { %1645 = vmatmul.msk.f32.gmra.mxu0 %vm718_vm1, %v610_v4  ;;  %1670 = vmatmul.msk.f32.gmra.mxu1 %vm718_vm1, %v1569_v5 }
  0xc2   : > { %1696 = vmatmul.msk.f32.gmra.mxu2 %vm718_vm1, %v1595_v6  ;;  %1721 = vmatmul.msk.f32.gmra.mxu3 %vm718_vm1, %v1620_v7  ;;  %v1607_v6 = vld [vmem:[%s2115_s27 + $0x220] sm:$0xff]  ;;  %v1632_v7 = vld [vmem:[%s2115_s27 + $0x2e8] sm:$0xff] }
  0xc4   : > { %1646 = vmatmul.msk.f32.gmra.mxu0 %vm718_vm1, %v611_v8  ;;  %1671 = vmatmul.msk.f32.gmra.mxu1 %vm718_vm1, %v1570_v9 }
  0xca   : > { %1697 = vmatmul.msk.f32.gmra.mxu2 %vm718_vm1, %v1596_v10  ;;  %1722 = vmatmul.msk.f32.gmra.mxu3 %vm718_vm1, %v1621_v11  ;;  %v623_v11 = vld [vmem:[%s2115_s27 + $0x90] sm:$0xff] }
  0xcc   : > { %1647 = vmatmul.msk.f32.gmra.mxu0 %vm718_vm1, %v612_v12  ;;  %1672 = vmatmul.msk.f32.gmra.mxu1 %vm718_vm1, %v1571_v13  ;;  %v1582_v12 = vld [vmem:[%s2115_s27 + $0x158] sm:$0xff] }
  0xd2   : > { %1698 = vmatmul.msk.f32.gmra.mxu2 %vm718_vm1, %v1597_v14  ;;  %1723 = vmatmul.msk.f32.gmra.mxu3 %vm718_vm1, %v1622_v15 }
  0xd4   : > { %1648 = vmatmul.msk.f32.gmra.mxu0 %vm718_vm1, %v613_v16  ;;  %1673 = vmatmul.msk.f32.gmra.mxu1 %vm718_vm1, %v1572_v17 }
  0xda   : > { %1699 = vmatmul.msk.f32.gmra.mxu2 %vm718_vm1, %v1598_v18  ;;  %1724 = vmatmul.msk.f32.gmra.mxu3 %vm718_vm1, %v1623_v19  ;;  %v1608_v19 = vld [vmem:[%s2115_s27 + $0x228] sm:$0xff] }
  0xdc   : > { %1649 = vmatmul.msk.f32.gmra.mxu0 %vm718_vm1, %v614_v20  ;;  %1674 = vmatmul.msk.f32.gmra.mxu1 %vm718_vm1, %v1573_v21  ;;  %v1633_v20 = vld [vmem:[%s2115_s27 + $0x2f0] sm:$0xff] }
  0xe2   : > { %1700 = vmatmul.msk.f32.gmra.mxu2 %vm718_vm1, %v1599_v22  ;;  %1725 = vmatmul.msk.f32.gmra.mxu3 %vm718_vm1, %v1624_v23 }
  0xe4   : > { %1650 = vmatmul.msk.f32.gmra.mxu0 %vm718_vm1, %v615_v24  ;;  %1675 = vmatmul.msk.f32.gmra.mxu1 %vm718_vm1, %v1574_v25  ;;  %v624_v24 = vld [vmem:[%s2115_s27 + $0x98] sm:$0xff]  ;;  %v1583_v25 = vld [vmem:[%s2115_s27 + $0x160] sm:$0xff] }
  0xea   : > { %1701 = vmatmul.msk.f32.gmra.mxu2 %vm718_vm1, %v1600_v26  ;;  %1726 = vmatmul.msk.f32.gmra.mxu3 %vm718_vm1, %v1625_v27 }
  0xec   : > { %1651 = vmatmul.msk.f32.gmra.mxu0 %vm718_vm1, %v616_v28  ;;  %1676 = vmatmul.msk.f32.gmra.mxu1 %vm718_vm1, %v1575_v29 }
  0xf2   : > { %1702 = vmatmul.msk.f32.gmra.mxu2 %vm718_vm1, %v1601_v30  ;;  %1727 = vmatmul.msk.f32.gmra.mxu3 %vm718_vm1, %v1626_v31 }
  0xf4   : > { %1652 = vmatmul.msk.f32.gmra.mxu0 %vm718_vm1, %v617_v32  ;;  %1677 = vmatmul.msk.f32.gmra.mxu1 %vm718_vm1, %v1576_v33  ;;  %v1609_v32 = vld [vmem:[%s2115_s27 + $0x230] sm:$0xff]  ;;  %v1634_v33 = vld [vmem:[%s2115_s27 + $0x2f8] sm:$0xff] }
  0xfa   : > { %1703 = vmatmul.msk.f32.gmra.mxu2 %vm718_vm1, %v1602_v34  ;;  %1728 = vmatmul.msk.f32.gmra.mxu3 %vm718_vm1, %v1627_v35 }
  0xfc   : > { %1653 = vmatmul.msk.f32.gmra.mxu0 %vm718_vm1, %v618_v36  ;;  %1678 = vmatmul.msk.f32.gmra.mxu1 %vm718_vm1, %v1577_v37  ;;  %v625_v37 = vld [vmem:[%s2115_s27 + $0xa0] sm:$0xff] }
 0x102   : > { %1704 = vmatmul.msk.f32.gmra.mxu2 %vm718_vm1, %v1603_v38  ;;  %1729 = vmatmul.msk.f32.gmra.mxu3 %vm718_vm1, %v1628_v39  ;;  %v1584_v38 = vld [vmem:[%s2115_s27 + $0x168] sm:$0xff] }
 0x104   : > { %1654 = vmatmul.msk.f32.gmra.mxu0 %vm718_vm1, %v619_v40  ;;  %1679 = vmatmul.msk.f32.gmra.mxu1 %vm718_vm1, %v1578_v41 }
 0x10a   : > { %1705 = vmatmul.msk.f32.gmra.mxu2 %vm718_vm1, %v1604_v42  ;;  %1730 = vmatmul.msk.f32.gmra.mxu3 %vm718_vm1, %v1629_v43 }
 0x10c   : > { %1655 = vmatmul.msk.f32.gmra.mxu0 %vm718_vm1, %v620_v44  ;;  %1680 = vmatmul.msk.f32.gmra.mxu1 %vm718_vm1, %v1579_v45  ;;  %v1610_v45 = vld [vmem:[%s2115_s27 + $0x238] sm:$0xff] }
 0x111   : > { %v1040_v48 = vpop.f32.mrf.mxu0  ;;  %v1115_v49 = vpop.f32.mrf.mxu1 }
 0x112   : > { %1706 = vmatmul.msk.f32.gmra.mxu2 %vm718_vm1, %v1605_v46  ;;  %1731 = vmatmul.msk.f32.gmra.mxu3 %vm718_vm1, %v1630_v47  ;;  %v1340_v52 = vmax.f32 %v1040_v48, %v1115_v49  ;;  %v1635_v46 = vld [vmem:[%s2115_s27 + $0x300] sm:$0xff] }
 0x114   : > { %1656 = vmatmul.msk.f32.gmra.mxu0 %vm718_vm1, %v621_v50  ;;  %1681 = vmatmul.msk.f32.gmra.mxu1 %vm718_vm1, %v1580_v51  ;;  %v626_v50 = vld [vmem:[%s2115_s27 + $0xa8] sm:$0xff]  ;;  %v1585_v51 = vld [vmem:[%s2115_s27 + $0x170] sm:$0xff] }
 0x115   : > { %v1190_v53 = vpop.f32.mrf.mxu2  ;;  %v1265_v54 = vpop.f32.mrf.mxu3 }
 0x116   : > { %v1365_v55 = vmax.f32 %v1190_v53, %v1265_v54 }
 0x118   : > { %v1390_v59 = vmax.f32 %v1340_v52, %v1365_v55 }
 0x119   : > { %v1043_v60 = vpop.f32.mrf.mxu0  ;;  %v1118_v61 = vpop.f32.mrf.mxu1 }
 0x11a   : > { %v1419_v0 = vadd.f32 %v2258_v56, %v1390_v59  ;;  %1707 = vmatmul.msk.f32.gmra.mxu2 %vm718_vm1, %v1606_v57  ;;  %1732 = vmatmul.msk.f32.gmra.mxu3 %vm718_vm1, %v1631_v58  ;;  %v1341_v2 = vmax.f32 %v1043_v60, %v1118_v61  ;;  %v1611_v59 = vld [vmem:[%s2115_s27 + $0x240] sm:$0xff]  ;;  %v1636_v60 = vld [vmem:[%s2115_s27 + $0x308] sm:$0xff] }
 0x11c   : > { %v1444_v1 = vmax.f32 %v1419_v0, 0.0  ;;  %1657 = vmatmul.msk.f32.gmra.mxu0 %vm718_vm1, %v622_v62  ;;  %1682 = vmatmul.msk.f32.gmra.mxu1 %vm718_vm1, %v1581_v63  ;;  %v627_v0 = vld [vmem:[%s2115_s27 + $0xb0] sm:$0xff] }
 0x11d   : > { %v1193_v3 = vpop.f32.mrf.mxu2  ;;  %v1268_v4 = vpop.f32.mrf.mxu3 }
 0x11e   : > { %1470 = vst.msk [vmem:[%s2270_s5] sm:$0xff] %vm1469_vm2, %v1444_v1  ;;  %v1366_v5 = vmax.f32 %v1193_v3, %v1268_v4  ;;  %v1586_v1 = vld [vmem:[%s2115_s27 + $0x178] sm:$0xff] }
 0x120   : > { %v1391_v8 = vmax.f32 %v1341_v2, %v1366_v5 }
 0x121   : > { %v1046_v9 = vpop.f32.mrf.mxu0  ;;  %v1121_v10 = vpop.f32.mrf.mxu1 }
 0x122   : > { %v1420_v13 = vadd.f32 %v2258_v56, %v1391_v8  ;;  %1708 = vmatmul.msk.f32.gmra.mxu2 %vm718_vm1, %v1607_v6  ;;  %1733 = vmatmul.msk.f32.gmra.mxu3 %vm718_vm1, %v1632_v7  ;;  %v1342_v15 = vmax.f32 %v1046_v9, %v1121_v10  ;;  %v1612_v8 = vld [vmem:[%s2115_s27 + $0x248] sm:$0xff]  ;;  %v1637_v9 = vld [vmem:[%s2115_s27 + $0x310] sm:$0xff] }
 0x124   : > { %v1445_v14 = vmax.f32 %v1420_v13, 0.0  ;;  %1658 = vmatmul.msk.f32.gmra.mxu0 %vm718_vm1, %v623_v11  ;;  %1683 = vmatmul.msk.f32.gmra.mxu1 %vm718_vm1, %v1582_v12  ;;  %v628_v13 = vld [vmem:[%s2115_s27 + $0xb8] sm:$0xff] }
 0x125   : > { %v1196_v16 = vpop.f32.mrf.mxu2  ;;  %v1271_v17 = vpop.f32.mrf.mxu3 }
 0x126   : > { %1471 = vst.msk [vmem:[%s2270_s5 + $0x8] sm:$0xff] %vm1469_vm2, %v1445_v14  ;;  %v1367_v18 = vmax.f32 %v1196_v16, %v1271_v17  ;;  %v1587_v14 = vld [vmem:[%s2115_s27 + $0x180] sm:$0xff] }
 0x128   : > { %v1392_v21 = vmax.f32 %v1342_v15, %v1367_v18 }
 0x129   : > { %v1049_v22 = vpop.f32.mrf.mxu0  ;;  %v1124_v23 = vpop.f32.mrf.mxu1 }
 0x12a   : > { %v1421_v26 = vadd.f32 %v2258_v56, %v1392_v21  ;;  %1709 = vmatmul.msk.f32.gmra.mxu2 %vm718_vm1, %v1608_v19  ;;  %1734 = vmatmul.msk.f32.gmra.mxu3 %vm718_vm1, %v1633_v20  ;;  %v1343_v28 = vmax.f32 %v1049_v22, %v1124_v23  ;;  %v1613_v21 = vld [vmem:[%s2115_s27 + $0x250] sm:$0xff]  ;;  %v1638_v22 = vld [vmem:[%s2115_s27 + $0x318] sm:$0xff] }
 0x12c   : > { %v1446_v27 = vmax.f32 %v1421_v26, 0.0  ;;  %1659 = vmatmul.msk.f32.gmra.mxu0 %vm718_vm1, %v624_v24  ;;  %1684 = vmatmul.msk.f32.gmra.mxu1 %vm718_vm1, %v1583_v25  ;;  %v629_v26 = vld [vmem:[%s2115_s27 + $0xc0] sm:$0xff] }
 0x12d   : > { %v1199_v29 = vpop.f32.mrf.mxu2  ;;  %v1274_v30 = vpop.f32.mrf.mxu3 }
 0x12e   : > { %1472 = vst.msk [vmem:[%s2270_s5 + $0x10] sm:$0xff] %vm1469_vm2, %v1446_v27  ;;  %v1368_v31 = vmax.f32 %v1199_v29, %v1274_v30  ;;  %v1588_v27 = vld [vmem:[%s2115_s27 + $0x188] sm:$0xff] }
 0x130   : > { %v1393_v34 = vmax.f32 %v1343_v28, %v1368_v31 }
 0x131   : > { %v1052_v35 = vpop.f32.mrf.mxu0  ;;  %v1127_v36 = vpop.f32.mrf.mxu1 }
 0x132   : > { %v1422_v39 = vadd.f32 %v2258_v56, %v1393_v34  ;;  %1710 = vmatmul.msk.f32.gmra.mxu2 %vm718_vm1, %v1609_v32  ;;  %1735 = vmatmul.msk.f32.gmra.mxu3 %vm718_vm1, %v1634_v33  ;;  %v1344_v41 = vmax.f32 %v1052_v35, %v1127_v36 }
 0x134   : > { %v1447_v40 = vmax.f32 %v1422_v39, 0.0  ;;  %1660 = vmatmul.msk.f32.gmra.mxu0 %vm718_vm1, %v625_v37  ;;  %1685 = vmatmul.msk.f32.gmra.mxu1 %vm718_vm1, %v1584_v38 }
 0x135   : > { %v1202_v42 = vpop.f32.mrf.mxu2  ;;  %v1277_v43 = vpop.f32.mrf.mxu3 }
 0x136   : > { %1473 = vst.msk [vmem:[%s2270_s5 + $0x18] sm:$0xff] %vm1469_vm2, %v1447_v40  ;;  %v1369_v44 = vmax.f32 %v1202_v42, %v1277_v43 }
 0x138   : > { %v1394_v47 = vmax.f32 %v1344_v41, %v1369_v44 }
 0x139   : > { %v1055_v48 = vpop.f32.mrf.mxu0  ;;  %v1130_v49 = vpop.f32.mrf.mxu1 }
 0x13a   : > { %v1423_v52 = vadd.f32 %v2258_v56, %v1394_v47  ;;  %1711 = vmatmul.msk.f32.gmra.mxu2 %vm718_vm1, %v1610_v45  ;;  %1736 = vmatmul.msk.f32.gmra.mxu3 %vm718_vm1, %v1635_v46  ;;  %v1345_v54 = vmax.f32 %v1055_v48, %v1130_v49 }
 0x13c   : > { %v1448_v53 = vmax.f32 %v1423_v52, 0.0  ;;  %1661 = vmatmul.msk.f32.gmra.mxu0 %vm718_vm1, %v626_v50  ;;  %1686 = vmatmul.msk.f32.gmra.mxu1 %vm718_vm1, %v1585_v51 }
 0x13d   : > { %v1205_v55 = vpop.f32.mrf.mxu2  ;;  %v1280_v57 = vpop.f32.mrf.mxu3 }
 0x13e   : > { %1474 = vst.msk [vmem:[%s2270_s5 + $0x20] sm:$0xff] %vm1469_vm2, %v1448_v53  ;;  %v1370_v58 = vmax.f32 %v1205_v55, %v1280_v57 }
 0x140   : > { %v1395_v61 = vmax.f32 %v1345_v54, %v1370_v58 }
 0x141   : > { %v1058_v62 = vpop.f32.mrf.mxu0  ;;  %v1133_v63 = vpop.f32.mrf.mxu1 }
 0x142   : > { %v1424_v2 = vadd.f32 %v2258_v56, %v1395_v61  ;;  %1712 = vmatmul.msk.f32.gmra.mxu2 %vm718_vm1, %v1611_v59  ;;  %1737 = vmatmul.msk.f32.gmra.mxu3 %vm718_vm1, %v1636_v60  ;;  %v1346_v4 = vmax.f32 %v1058_v62, %v1133_v63 }
 0x144   : > { %v1449_v3 = vmax.f32 %v1424_v2, 0.0  ;;  %1662 = vmatmul.msk.f32.gmra.mxu0 %vm718_vm1, %v627_v0  ;;  %1687 = vmatmul.msk.f32.gmra.mxu1 %vm718_vm1, %v1586_v1 }
 0x145   : > { %v1208_v5 = vpop.f32.mrf.mxu2  ;;  %v1283_v6 = vpop.f32.mrf.mxu3 }
 0x146   : > { %1475 = vst.msk [vmem:[%s2270_s5 + $0x28] sm:$0xff] %vm1469_vm2, %v1449_v3  ;;  %v1371_v7 = vmax.f32 %v1208_v5, %v1283_v6 }
 0x148   : > { %v1396_v10 = vmax.f32 %v1346_v4, %v1371_v7 }
 0x149   : > { %v1061_v11 = vpop.f32.mrf.mxu0  ;;  %v1136_v12 = vpop.f32.mrf.mxu1 }
 0x14a   : > { %v1425_v15 = vadd.f32 %v2258_v56, %v1396_v10  ;;  %1713 = vmatmul.msk.f32.gmra.mxu2 %vm718_vm1, %v1612_v8  ;;  %1738 = vmatmul.msk.f32.gmra.mxu3 %vm718_vm1, %v1637_v9  ;;  %v1347_v17 = vmax.f32 %v1061_v11, %v1136_v12 }
 0x14c   : > { %v1450_v16 = vmax.f32 %v1425_v15, 0.0  ;;  %1663 = vmatmul.msk.f32.gmra.mxu0 %vm718_vm1, %v628_v13  ;;  %1688 = vmatmul.msk.f32.gmra.mxu1 %vm718_vm1, %v1587_v14 }
 0x14d   : > { %v1211_v18 = vpop.f32.mrf.mxu2  ;;  %v1286_v19 = vpop.f32.mrf.mxu3 }
 0x14e   : > { %1476 = vst.msk [vmem:[%s2270_s5 + $0x30] sm:$0xff] %vm1469_vm2, %v1450_v16  ;;  %v1372_v20 = vmax.f32 %v1211_v18, %v1286_v19 }
 0x150   : > { %v1397_v23 = vmax.f32 %v1347_v17, %v1372_v20 }
 0x151   : > { %v1064_v24 = vpop.f32.mrf.mxu0  ;;  %v1139_v25 = vpop.f32.mrf.mxu1 }
 0x152   : > { %v1426_v28 = vadd.f32 %v2258_v56, %v1397_v23  ;;  %1714 = vmatmul.msk.f32.gmra.mxu2 %vm718_vm1, %v1613_v21  ;;  %1739 = vmatmul.msk.f32.gmra.mxu3 %vm718_vm1, %v1638_v22  ;;  %v1348_v30 = vmax.f32 %v1064_v24, %v1139_v25 }
 0x154   : > { %v1451_v29 = vmax.f32 %v1426_v28, 0.0  ;;  %1664 = vmatmul.msk.f32.gmra.mxu0 %vm718_vm1, %v629_v26  ;;  %1689 = vmatmul.msk.f32.gmra.mxu1 %vm718_vm1, %v1588_v27 }
 0x155   : > { %v1214_v31 = vpop.f32.mrf.mxu2  ;;  %v1289_v32 = vpop.f32.mrf.mxu3 }
 0x156   : > { %1477 = vst.msk [vmem:[%s2270_s5 + $0x38] sm:$0xff] %vm1469_vm2, %v1451_v29  ;;  %v1373_v33 = vmax.f32 %v1214_v31, %v1289_v32 }
 0x158   : > { %v1398_v34 = vmax.f32 %v1348_v30, %v1373_v33 }
 0x159   : > { %v1067_v35 = vpop.f32.mrf.mxu0  ;;  %v1142_v36 = vpop.f32.mrf.mxu1 }
 0x15a   : > { %v1427_v37 = vadd.f32 %v2258_v56, %v1398_v34  ;;  %v1349_v39 = vmax.f32 %v1067_v35, %v1142_v36 }
 0x15c   : > { %v1452_v38 = vmax.f32 %v1427_v37, 0.0 }
 0x15d   : > { %v1217_v40 = vpop.f32.mrf.mxu2  ;;  %v1292_v41 = vpop.f32.mrf.mxu3 }
 0x15e   : > { %1478 = vst.msk [vmem:[%s2270_s5 + $0x40] sm:$0xff] %vm1469_vm2, %v1452_v38  ;;  %v1374_v42 = vmax.f32 %v1217_v40, %v1292_v41 }
 0x160   : > { %v1399_v43 = vmax.f32 %v1349_v39, %v1374_v42 }
 0x161   : > { %v1070_v44 = vpop.f32.mrf.mxu0  ;;  %v1145_v45 = vpop.f32.mrf.mxu1 }
 0x162   : > { %v1428_v46 = vadd.f32 %v2258_v56, %v1399_v43  ;;  %v1350_v48 = vmax.f32 %v1070_v44, %v1145_v45 }
 0x164   : > { %v1453_v47 = vmax.f32 %v1428_v46, 0.0 }
 0x165   : > { %v1220_v49 = vpop.f32.mrf.mxu2  ;;  %v1295_v50 = vpop.f32.mrf.mxu3 }
 0x166   : > { %1479 = vst.msk [vmem:[%s2270_s5 + $0x48] sm:$0xff] %vm1469_vm2, %v1453_v47  ;;  %v1375_v51 = vmax.f32 %v1220_v49, %v1295_v50 }
 0x168   : > { %v1400_v52 = vmax.f32 %v1350_v48, %v1375_v51 }
 0x169   : > { %v1073_v53 = vpop.f32.mrf.mxu0  ;;  %v1148_v54 = vpop.f32.mrf.mxu1 }
 0x16a   : > { %v1429_v55 = vadd.f32 %v2258_v56, %v1400_v52  ;;  %v1351_v58 = vmax.f32 %v1073_v53, %v1148_v54 }
 0x16c   : > { %v1454_v57 = vmax.f32 %v1429_v55, 0.0 }
 0x16d   : > { %v1223_v59 = vpop.f32.mrf.mxu2  ;;  %v1298_v60 = vpop.f32.mrf.mxu3 }
 0x16e   : > { %1480 = vst.msk [vmem:[%s2270_s5 + $0x50] sm:$0xff] %vm1469_vm2, %v1454_v57  ;;  %v1376_v61 = vmax.f32 %v1223_v59, %v1298_v60 }
 0x170   : > { %v1401_v62 = vmax.f32 %v1351_v58, %v1376_v61 }
 0x171   : > { %v1076_v63 = vpop.f32.mrf.mxu0  ;;  %v1151_v0 = vpop.f32.mrf.mxu1 }
 0x172   : > { %v1430_v1 = vadd.f32 %v2258_v56, %v1401_v62  ;;  %v1352_v3 = vmax.f32 %v1076_v63, %v1151_v0 }
 0x174   : > { %v1455_v2 = vmax.f32 %v1430_v1, 0.0 }
 0x175   : > { %v1226_v4 = vpop.f32.mrf.mxu2  ;;  %v1301_v5 = vpop.f32.mrf.mxu3 }
 0x176   : > { %1481 = vst.msk [vmem:[%s2270_s5 + $0x58] sm:$0xff] %vm1469_vm2, %v1455_v2  ;;  %v1377_v6 = vmax.f32 %v1226_v4, %v1301_v5 }
 0x178   : > { %v1402_v7 = vmax.f32 %v1352_v3, %v1377_v6 }
 0x179   : > { %v1079_v8 = vpop.f32.mrf.mxu0  ;;  %v1154_v9 = vpop.f32.mrf.mxu1 }
 0x17a   : > { %v1431_v10 = vadd.f32 %v2258_v56, %v1402_v7  ;;  %v1353_v12 = vmax.f32 %v1079_v8, %v1154_v9 }
 0x17c   : > { %v1456_v11 = vmax.f32 %v1431_v10, 0.0 }
 0x17d   : > { %v1229_v13 = vpop.f32.mrf.mxu2  ;;  %v1304_v14 = vpop.f32.mrf.mxu3 }
 0x17e   : > { %1482 = vst.msk [vmem:[%s2270_s5 + $0x60] sm:$0xff] %vm1469_vm2, %v1456_v11  ;;  %v1378_v15 = vmax.f32 %v1229_v13, %v1304_v14 }
 0x180   : > { %v1403_v16 = vmax.f32 %v1353_v12, %v1378_v15 }
 0x181   : > { %v1082_v17 = vpop.f32.mrf.mxu0  ;;  %v1157_v18 = vpop.f32.mrf.mxu1 }
 0x182   : > { %v1432_v19 = vadd.f32 %v2258_v56, %v1403_v16  ;;  %v1354_v21 = vmax.f32 %v1082_v17, %v1157_v18 }
 0x184   : > { %v1457_v20 = vmax.f32 %v1432_v19, 0.0 }
 0x185   : > { %v1232_v22 = vpop.f32.mrf.mxu2  ;;  %v1307_v23 = vpop.f32.mrf.mxu3 }
 0x186   : > { %1483 = vst.msk [vmem:[%s2270_s5 + $0x68] sm:$0xff] %vm1469_vm2, %v1457_v20  ;;  %v1379_v24 = vmax.f32 %v1232_v22, %v1307_v23 }
 0x188   : > { %v1404_v25 = vmax.f32 %v1354_v21, %v1379_v24 }
 0x189   : > { %v1085_v26 = vpop.f32.mrf.mxu0  ;;  %v1160_v27 = vpop.f32.mrf.mxu1 }
 0x18a   : > { %v1433_v28 = vadd.f32 %v2258_v56, %v1404_v25  ;;  %v1355_v30 = vmax.f32 %v1085_v26, %v1160_v27 }
 0x18c   : > { %v1458_v29 = vmax.f32 %v1433_v28, 0.0 }
 0x18d   : > { %v1235_v31 = vpop.f32.mrf.mxu2  ;;  %v1310_v32 = vpop.f32.mrf.mxu3 }
 0x18e   : > { %1484 = vst.msk [vmem:[%s2270_s5 + $0x70] sm:$0xff] %vm1469_vm2, %v1458_v29  ;;  %v1380_v33 = vmax.f32 %v1235_v31, %v1310_v32 }
 0x190   : > { %v1405_v34 = vmax.f32 %v1355_v30, %v1380_v33 }
 0x191   : > { %v1088_v35 = vpop.f32.mrf.mxu0  ;;  %v1163_v36 = vpop.f32.mrf.mxu1 }
 0x192   : > { %v1434_v37 = vadd.f32 %v2258_v56, %v1405_v34  ;;  %v1356_v39 = vmax.f32 %v1088_v35, %v1163_v36 }
 0x194   : > { %v1459_v38 = vmax.f32 %v1434_v37, 0.0 }
 0x195   : > { %v1238_v40 = vpop.f32.mrf.mxu2  ;;  %v1313_v41 = vpop.f32.mrf.mxu3 }
 0x196   : > { %1485 = vst.msk [vmem:[%s2270_s5 + $0x78] sm:$0xff] %vm1469_vm2, %v1459_v38  ;;  %v1381_v42 = vmax.f32 %v1238_v40, %v1313_v41 }
 0x198   : > { %v1406_v43 = vmax.f32 %v1356_v39, %v1381_v42 }
 0x199   : > { %v1091_v44 = vpop.f32.mrf.mxu0  ;;  %v1166_v45 = vpop.f32.mrf.mxu1 }
 0x19a   : > { %v1435_v46 = vadd.f32 %v2258_v56, %v1406_v43  ;;  %v1357_v48 = vmax.f32 %v1091_v44, %v1166_v45 }
 0x19c   : > { %v1460_v47 = vmax.f32 %v1435_v46, 0.0 }
 0x19d   : > { %v1241_v49 = vpop.f32.mrf.mxu2  ;;  %v1316_v50 = vpop.f32.mrf.mxu3 }
 0x19e   : > { %1486 = vst.msk [vmem:[%s2270_s5 + $0x80] sm:$0xff] %vm1469_vm2, %v1460_v47  ;;  %v1382_v51 = vmax.f32 %v1241_v49, %v1316_v50 }
 0x1a0   : > { %v1407_v52 = vmax.f32 %v1357_v48, %v1382_v51 }
 0x1a1   : > { %v1094_v53 = vpop.f32.mrf.mxu0  ;;  %v1169_v54 = vpop.f32.mrf.mxu1 }
 0x1a2   : > { %v1436_v55 = vadd.f32 %v2258_v56, %v1407_v52  ;;  %v1358_v58 = vmax.f32 %v1094_v53, %v1169_v54 }
 0x1a4   : > { %v1461_v57 = vmax.f32 %v1436_v55, 0.0 }
 0x1a5   : > { %v1244_v59 = vpop.f32.mrf.mxu2  ;;  %v1319_v60 = vpop.f32.mrf.mxu3 }
 0x1a6   : > { %1487 = vst.msk [vmem:[%s2270_s5 + $0x88] sm:$0xff] %vm1469_vm2, %v1461_v57  ;;  %v1383_v61 = vmax.f32 %v1244_v59, %v1319_v60 }
 0x1a8   : > { %v1408_v62 = vmax.f32 %v1358_v58, %v1383_v61 }
 0x1a9   : > { %v1097_v63 = vpop.f32.mrf.mxu0  ;;  %v1172_v0 = vpop.f32.mrf.mxu1 }
 0x1aa   : > { %v1437_v1 = vadd.f32 %v2258_v56, %v1408_v62  ;;  %v1359_v3 = vmax.f32 %v1097_v63, %v1172_v0 }
 0x1ac   : > { %v1462_v2 = vmax.f32 %v1437_v1, 0.0 }
 0x1ad   : > { %v1247_v4 = vpop.f32.mrf.mxu2  ;;  %v1322_v5 = vpop.f32.mrf.mxu3 }
 0x1ae   : > { %1488 = vst.msk [vmem:[%s2270_s5 + $0x90] sm:$0xff] %vm1469_vm2, %v1462_v2  ;;  %v1384_v6 = vmax.f32 %v1247_v4, %v1322_v5 }
 0x1b0   : > { %v1409_v7 = vmax.f32 %v1359_v3, %v1384_v6 }
 0x1b1   : > { %v1100_v8 = vpop.f32.mrf.mxu0  ;;  %v1175_v9 = vpop.f32.mrf.mxu1 }
 0x1b2   : > { %v1438_v10 = vadd.f32 %v2258_v56, %v1409_v7  ;;  %v1360_v12 = vmax.f32 %v1100_v8, %v1175_v9 }
 0x1b4   : > { %v1463_v11 = vmax.f32 %v1438_v10, 0.0 }
 0x1b5   : > { %v1250_v13 = vpop.f32.mrf.mxu2  ;;  %v1325_v14 = vpop.f32.mrf.mxu3 }
 0x1b6   : > { %1489 = vst.msk [vmem:[%s2270_s5 + $0x98] sm:$0xff] %vm1469_vm2, %v1463_v11  ;;  %v1385_v15 = vmax.f32 %v1250_v13, %v1325_v14 }
 0x1b8   : > { %v1410_v16 = vmax.f32 %v1360_v12, %v1385_v15 }
 0x1b9   : > { %v1103_v17 = vpop.f32.mrf.mxu0  ;;  %v1178_v18 = vpop.f32.mrf.mxu1 }
 0x1ba   : > { %v1439_v19 = vadd.f32 %v2258_v56, %v1410_v16  ;;  %v1361_v21 = vmax.f32 %v1103_v17, %v1178_v18 }
 0x1bc   : > { %v1464_v20 = vmax.f32 %v1439_v19, 0.0 }
 0x1bd   : > { %v1253_v22 = vpop.f32.mrf.mxu2  ;;  %v1328_v23 = vpop.f32.mrf.mxu3 }
 0x1be   : > { %1490 = vst.msk [vmem:[%s2270_s5 + $0xa0] sm:$0xff] %vm1469_vm2, %v1464_v20  ;;  %v1386_v24 = vmax.f32 %v1253_v22, %v1328_v23 }
 0x1c0   : > { %v1411_v25 = vmax.f32 %v1361_v21, %v1386_v24 }
 0x1c1   : > { %v1106_v26 = vpop.f32.mrf.mxu0  ;;  %v1181_v27 = vpop.f32.mrf.mxu1 }
 0x1c2   : > { %v1440_v28 = vadd.f32 %v2258_v56, %v1411_v25  ;;  %v1362_v30 = vmax.f32 %v1106_v26, %v1181_v27 }
 0x1c4   : > { %v1465_v29 = vmax.f32 %v1440_v28, 0.0 }
 0x1c5   : > { %v1256_v31 = vpop.f32.mrf.mxu2  ;;  %v1331_v32 = vpop.f32.mrf.mxu3 }
 0x1c6   : > { %1491 = vst.msk [vmem:[%s2270_s5 + $0xa8] sm:$0xff] %vm1469_vm2, %v1465_v29  ;;  %v1387_v33 = vmax.f32 %v1256_v31, %v1331_v32 }
 0x1c8   : > { %v1412_v34 = vmax.f32 %v1362_v30, %v1387_v33 }
 0x1c9   : > { %v1109_v35 = vpop.f32.mrf.mxu0  ;;  %v1184_v36 = vpop.f32.mrf.mxu1 }
 0x1ca   : > { %v1441_v37 = vadd.f32 %v2258_v56, %v1412_v34  ;;  %v1363_v39 = vmax.f32 %v1109_v35, %v1184_v36 }
 0x1cc   : > { %v1466_v38 = vmax.f32 %v1441_v37, 0.0 }
 0x1cd   : > { %v1259_v40 = vpop.f32.mrf.mxu2  ;;  %v1334_v41 = vpop.f32.mrf.mxu3 }
 0x1ce   : > { %1492 = vst.msk [vmem:[%s2270_s5 + $0xb0] sm:$0xff] %vm1469_vm2, %v1466_v38  ;;  %v1388_v42 = vmax.f32 %v1259_v40, %v1334_v41 }
 0x1d0   : > { %v1413_v43 = vmax.f32 %v1363_v39, %v1388_v42 }
 0x1d1   : > { %v1112_v44 = vpop.f32.mrf.mxu0  ;;  %v1187_v45 = vpop.f32.mrf.mxu1 }
 0x1d2   : > { %v1442_v46 = vadd.f32 %v2258_v56, %v1413_v43  ;;  %v1364_v48 = vmax.f32 %v1112_v44, %v1187_v45 }
 0x1d4   : > { %v1467_v47 = vmax.f32 %v1442_v46, 0.0 }
 0x1d5   : > { %v1262_v49 = vpop.f32.mrf.mxu2  ;;  %v1337_v50 = vpop.f32.mrf.mxu3 }
 0x1d6   : > { %1493 = vst.msk [vmem:[%s2270_s5 + $0xb8] sm:$0xff] %vm1469_vm2, %v1467_v47  ;;  %v1389_v51 = vmax.f32 %v1262_v49, %v1337_v50 }
 0x1d8   : > { %v1414_v52 = vmax.f32 %v1364_v48, %v1389_v51 }
 0x1da   : > { %v1443_v53 = vadd.f32 %v2258_v56, %v1414_v52 }
 0x1dc   : > { %v1468_v54 = vmax.f32 %v1443_v53, 0.0 }
 0x1de   : > { %1494 = vst.msk [vmem:[%s2270_s5 + $0xc0] sm:$0xff] %vm1469_vm2, %v1468_v54 }
 0x1df PF: > { %p10_p9 = scmp.ge.s32.totalorder %s1861_s16, 4   ;;  %s2418_s12 = smov %s1818_s13 }
 0x1e0   : > { %s2419_s13 = smov %s1870_s19  ;;  %s2420_s14 = smov %s1861_s16 }
 0x1e1   :  { %12 = sbr.rel (!%p10_p9) target bundleno = 2 (0x2), region = 108 }

// kernel: lenet_forward.4
= control target key start
LH: loop header
LB: loop body
LE: loop exit
PB: predicated region body
PF: predicated region fallthrough
CT: control target
= control target key end

     0   :  { %vm179_vm0 = vcmask 130048   ;;  %vm707_vm1 = vcmask 261120   ;;  %s1508_s1 = inlined_call_operand.vmem [shape: f32[400,32], index: 1, kind: input, shape index: {}]   ;;  %s1509_s0 = inlined_call_operand.vmem [shape: f32[4,56,400], index: 0, kind: input, shape index: {}]   ;;  %s1510_s2 = inlined_call_operand.vmem [shape: f32[1,32], index: 2, kind: input, shape index: {}]   ;;  %s1511_s3 = inlined_call_operand.vmem [shape: f32[56,32], index: 3, kind: output, shape index: {}]  }
   0x1   :  { %v176_v0 = vld [vmem:[%s1508_s1 + $0x178] sm:$0xff]  ;;  %v175_v1 = vld [vmem:[%s1508_s1 + $0x170] sm:$0xff]  ;;  %v174_v5 = vld [vmem:[%s1508_s1 + $0x168] sm:$0xff] }
   0x2   :  { %v144_v2 = vld [vmem:[%s1508_s1 + $0x78] sm:$0xff]  ;;  %466 = vmatpush.msra.mxu2 %v176_v0  ;;  %v143_v4 = vld [vmem:[%s1508_s1 + $0x70] sm:$0xff]  ;;  %v142_v7 = vld [vmem:[%s1508_s1 + $0x68] sm:$0xff] }
   0x3   :  { %264 = vmatpush.msra.mxu0 %v144_v2  ;;  %v160_v3 = vld [vmem:[%s1508_s1 + $0xf8] sm:$0xff]  ;;  %v159_v6 = vld [vmem:[%s1508_s1 + $0xf0] sm:$0xff]  ;;  %v158_v8 = vld [vmem:[%s1508_s1 + $0xe8] sm:$0xff] }
   0x4   :  { %365 = vmatpush.msra.mxu1 %v160_v3  ;;  %467 = vmatpush.msra.mxu2 %v175_v1  ;;  %v173_v9 = vld [vmem:[%s1508_s1 + $0x160] sm:$0xff]  ;;  %v172_v12 = vld [vmem:[%s1508_s1 + $0x158] sm:$0xff]  ;;  %v171_v15 = vld [vmem:[%s1508_s1 + $0x150] sm:$0xff] }
   0x5   :  { %265 = vmatpush.msra.mxu0 %v143_v4  ;;  %v141_v10 = vld [vmem:[%s1508_s1 + $0x60] sm:$0xff]  ;;  %v140_v13 = vld [vmem:[%s1508_s1 + $0x58] sm:$0xff]  ;;  %v139_v16 = vld [vmem:[%s1508_s1 + $0x50] sm:$0xff] }
   0x6   :  { %366 = vmatpush.msra.mxu1 %v159_v6  ;;  %468 = vmatpush.msra.mxu2 %v174_v5  ;;  %v157_v11 = vld [vmem:[%s1508_s1 + $0xe0] sm:$0xff]  ;;  %v156_v14 = vld [vmem:[%s1508_s1 + $0xd8] sm:$0xff]  ;;  %v155_v17 = vld [vmem:[%s1508_s1 + $0xd0] sm:$0xff] }
   0x7   :  { %266 = vmatpush.msra.mxu0 %v142_v7  ;;  %v170_v18 = vld [vmem:[%s1508_s1 + $0x148] sm:$0xff]  ;;  %v169_v21 = vld [vmem:[%s1508_s1 + $0x140] sm:$0xff]  ;;  %v168_v24 = vld [vmem:[%s1508_s1 + $0x138] sm:$0xff] }
   0x8   :  { %367 = vmatpush.msra.mxu1 %v158_v8  ;;  %469 = vmatpush.msra.mxu2 %v173_v9  ;;  %v138_v19 = vld [vmem:[%s1508_s1 + $0x48] sm:$0xff]  ;;  %v137_v22 = vld [vmem:[%s1508_s1 + $0x40] sm:$0xff]  ;;  %v136_v25 = vld [vmem:[%s1508_s1 + $0x38] sm:$0xff] }
   0x9   :  { %267 = vmatpush.msra.mxu0 %v141_v10  ;;  %v154_v20 = vld [vmem:[%s1508_s1 + $0xc8] sm:$0xff]  ;;  %v153_v23 = vld [vmem:[%s1508_s1 + $0xc0] sm:$0xff]  ;;  %v152_v27 = vld [vmem:[%s1508_s1 + $0xb8] sm:$0xff] }
   0xa   :  { %368 = vmatpush.msra.mxu1 %v157_v11  ;;  %470 = vmatpush.msra.mxu2 %v172_v12  ;;  %v178_v26 = vld [vmem:[%s1508_s1 + $0x188] sm:$0xff]  ;;  %v167_v28 = vld [vmem:[%s1508_s1 + $0x130] sm:$0xff]  ;;  %v177_v30 = vld [vmem:[%s1508_s1 + $0x180] sm:$0xff] }
   0xb   :  { %268 = vmatpush.msra.mxu0 %v140_v13  ;;  %v135_v29 = vld [vmem:[%s1508_s1 + $0x30] sm:$0xff]  ;;  %581 = vmatpush.msra.mxu3 %v178_v26  ;;  %v17_v32 = vld [vmem:[%s1509_s0 + $0x18] sm:$0xff]  ;;  %v166_v33 = vld [vmem:[%s1508_s1 + $0x128] sm:$0xff] }
   0xc   :  { %369 = vmatpush.msra.mxu1 %v156_v14  ;;  %471 = vmatpush.msra.mxu2 %v171_v15  ;;  %v151_v31 = vld [vmem:[%s1508_s1 + $0xb0] sm:$0xff]  ;;  %v134_v34 = vld [vmem:[%s1508_s1 + $0x28] sm:$0xff]  ;;  %v165_v36 = vld [vmem:[%s1508_s1 + $0x120] sm:$0xff] }
   0xd   :  { %269 = vmatpush.msra.mxu0 %v139_v16  ;;  %582 = vmatpush.msra.mxu3 %v177_v30  ;;  %v150_v35 = vld [vmem:[%s1508_s1 + $0xa8] sm:$0xff]  ;;  %v133_v37 = vld [vmem:[%s1508_s1 + $0x20] sm:$0xff]  ;;  %v164_v39 = vld [vmem:[%s1508_s1 + $0x118] sm:$0xff] }
   0xe   :  { %370 = vmatpush.msra.mxu1 %v155_v17  ;;  %472 = vmatpush.msra.mxu2 %v170_v18  ;;  %v149_v38 = vld [vmem:[%s1508_s1 + $0xa0] sm:$0xff]  ;;  %v132_v40 = vld [vmem:[%s1508_s1 + $0x18] sm:$0xff]  ;;  %v163_v42 = vld [vmem:[%s1508_s1 + $0x110] sm:$0xff] }
   0xf   :  { %270 = vmatpush.msra.mxu0 %v138_v19  ;;  %803 = vmatmul.msk.f32.vlgmr.msra.gmra.mxu3 %vm179_vm0, %v17_v32  ;;  %v148_v41 = vld [vmem:[%s1508_s1 + $0x98] sm:$0xff]  ;;  %v131_v43 = vld [vmem:[%s1508_s1 + $0x10] sm:$0xff]  ;;  %v162_v46 = vld [vmem:[%s1508_s1 + $0x108] sm:$0xff] }
  0x10   :  { %371 = vmatpush.msra.mxu1 %v154_v20  ;;  %473 = vmatpush.msra.mxu2 %v169_v21  ;;  %v147_v44 = vld [vmem:[%s1508_s1 + $0x90] sm:$0xff]  ;;  %v21_v45 = vld [vmem:[%s1509_s0 + $0x38] sm:$0xff]  ;;  %v130_v47 = vld [vmem:[%s1508_s1 + $0x8] sm:$0xff] }
  0x11   :  { %271 = vmatpush.msra.mxu0 %v137_v22  ;;  %v146_v48 = vld [vmem:[%s1508_s1 + $0x88] sm:$0xff]  ;;  %v161_v49 = vld [vmem:[%s1508_s1 + $0x100] sm:$0xff]  ;;  %v16_v51 = vld [vmem:[%s1509_s0 + $0x10] sm:$0xff] }
  0x12   :  { %372 = vmatpush.msra.mxu1 %v153_v23  ;;  %474 = vmatpush.msra.mxu2 %v168_v24  ;;  %v129_v50 = vld [vmem:[%s1508_s1] sm:$0xff]  ;;  %v15_v54 = vld [vmem:[%s1509_s0 + $0x8] sm:$0xff]  ;;  %v25_v55 = vld [vmem:[%s1509_s0 + $0x58] sm:$0xff] }
  0x13   :  { %272 = vmatpush.msra.mxu0 %v136_v25  ;;  %v145_v52 = vld [vmem:[%s1508_s1 + $0x80] sm:$0xff]  ;;  %v20_v56 = vld [vmem:[%s1509_s0 + $0x30] sm:$0xff]  ;;  %v19_v58 = vld [vmem:[%s1509_s0 + $0x28] sm:$0xff] }
  0x14   :  { %373 = vmatpush.msra.mxu1 %v152_v27  ;;  %475 = vmatpush.msra.mxu2 %v167_v28  ;;  %v14_v53 = vld [vmem:[%s1509_s0] sm:$0xff]  ;;  %v29_v59 = vld [vmem:[%s1509_s0 + $0x78] sm:$0xff]  ;;  %v24_v60 = vld [vmem:[%s1509_s0 + $0x50] sm:$0xff] }
  0x15   :  { %273 = vmatpush.msra.mxu0 %v135_v29  ;;  %v18_v57 = vld [vmem:[%s1509_s0 + $0x20] sm:$0xff]  ;;  %v23_v62 = vld [vmem:[%s1509_s0 + $0x48] sm:$0xff]  ;;  %v33_v63 = vld [vmem:[%s1509_s0 + $0x98] sm:$0xff] }
  0x16   :  { %374 = vmatpush.msra.mxu1 %v151_v31  ;;  %476 = vmatpush.msra.mxu2 %v166_v33  ;;  %v22_v61 = vld [vmem:[%s1509_s0 + $0x40] sm:$0xff]  ;;  %v28_v0 = vld [vmem:[%s1509_s0 + $0x70] sm:$0xff]  ;;  %v27_v2 = vld [vmem:[%s1509_s0 + $0x68] sm:$0xff] }
  0x17   :  { %274 = vmatpush.msra.mxu0 %v134_v34  ;;  %804 = vmatmul.msk.f32.gmra.mxu3 %vm179_vm0, %v21_v45  ;;  %v26_v1 = vld [vmem:[%s1509_s0 + $0x60] sm:$0xff]  ;;  %v37_v3 = vld [vmem:[%s1509_s0 + $0xb8] sm:$0xff]  ;;  %v32_v4 = vld [vmem:[%s1509_s0 + $0x90] sm:$0xff] }
  0x18   :  { %375 = vmatpush.msra.mxu1 %v150_v35  ;;  %477 = vmatpush.msra.mxu2 %v165_v36  ;;  %v30_v5 = vld [vmem:[%s1509_s0 + $0x80] sm:$0xff]  ;;  %v31_v6 = vld [vmem:[%s1509_s0 + $0x88] sm:$0xff]  ;;  %v41_v7 = vld [vmem:[%s1509_s0 + $0xd8] sm:$0xff] }
  0x19   :  { %275 = vmatpush.msra.mxu0 %v133_v37  ;;  %v36_v8 = vld [vmem:[%s1509_s0 + $0xb0] sm:$0xff]  ;;  %v34_v9 = vld [vmem:[%s1509_s0 + $0xa0] sm:$0xff]  ;;  %v35_v10 = vld [vmem:[%s1509_s0 + $0xa8] sm:$0xff] }
  0x1a   :  { %376 = vmatpush.msra.mxu1 %v149_v38  ;;  %478 = vmatpush.msra.mxu2 %v164_v39  ;;  %v722_v11 = vld [vmem:[%s1509_s0 + $0xf8] sm:$0xff]  ;;  %v40_v12 = vld [vmem:[%s1509_s0 + $0xd0] sm:$0xff]  ;;  %v38_v13 = vld [vmem:[%s1509_s0 + $0xc0] sm:$0xff] }
  0x1b   :  { %276 = vmatpush.msra.mxu0 %v132_v40  ;;  %v39_v14 = vld [vmem:[%s1509_s0 + $0xc8] sm:$0xff]  ;;  %v726_v15 = vld [vmem:[%s1509_s0 + $0x118] sm:$0xff]  ;;  %v721_v16 = vld [vmem:[%s1509_s0 + $0xf0] sm:$0xff] }
  0x1c   :  { %377 = vmatpush.msra.mxu1 %v148_v41  ;;  %479 = vmatpush.msra.mxu2 %v163_v42  ;;  %v719_v17 = vld [vmem:[%s1509_s0 + $0xe0] sm:$0xff]  ;;  %v720_v18 = vld [vmem:[%s1509_s0 + $0xe8] sm:$0xff]  ;;  %v730_v19 = vld [vmem:[%s1509_s0 + $0x138] sm:$0xff] }
  0x1d   :  { %277 = vmatpush.msra.mxu0 %v131_v43  ;;  %v725_v20 = vld [vmem:[%s1509_s0 + $0x110] sm:$0xff]  ;;  %v723_v21 = vld [vmem:[%s1509_s0 + $0x100] sm:$0xff]  ;;  %v724_v22 = vld [vmem:[%s1509_s0 + $0x108] sm:$0xff] }
  0x1e   :  { %378 = vmatpush.msra.mxu1 %v147_v44  ;;  %480 = vmatpush.msra.mxu2 %v162_v46  ;;  %v734_v23 = vld [vmem:[%s1509_s0 + $0x158] sm:$0xff]  ;;  %v729_v24 = vld [vmem:[%s1509_s0 + $0x130] sm:$0xff]  ;;  %v727_v25 = vld [vmem:[%s1509_s0 + $0x120] sm:$0xff] }
  0x1f   :  { %278 = vmatpush.msra.mxu0 %v130_v47  ;;  %805 = vmatmul.msk.f32.gmra.mxu3 %vm179_vm0, %v25_v55  ;;  %v728_v26 = vld [vmem:[%s1509_s0 + $0x128] sm:$0xff]  ;;  %v738_v27 = vld [vmem:[%s1509_s0 + $0x178] sm:$0xff]  ;;  %v733_v28 = vld [vmem:[%s1509_s0 + $0x150] sm:$0xff] }
  0x20   :  { %379 = vmatpush.msra.mxu1 %v146_v48  ;;  %481 = vmatpush.msra.mxu2 %v161_v49  ;;  %v731_v29 = vld [vmem:[%s1509_s0 + $0x140] sm:$0xff]  ;;  %v732_v30 = vld [vmem:[%s1509_s0 + $0x148] sm:$0xff]  ;;  %v742_v31 = vld [vmem:[%s1509_s0 + $0x198] sm:$0xff] }
  0x21   :  { %279 = vmatpush.msra.mxu0 %v129_v50  ;;  %482 = vmatmul.f32.vlgmr.msra.gmra.mxu2 %v16_v51  ;;  %v737_v32 = vld [vmem:[%s1509_s0 + $0x170] sm:$0xff]  ;;  %v735_v33 = vld [vmem:[%s1509_s0 + $0x160] sm:$0xff]  ;;  %v736_v34 = vld [vmem:[%s1509_s0 + $0x168] sm:$0xff] }
  0x22   :  { %380 = vmatpush.msra.mxu1 %v145_v52  ;;  %280 = vmatmul.f32.vlgmr.msra.gmra.mxu0 %v14_v53  ;;  %v746_v35 = vld [vmem:[%s1509_s0 + $0x1b8] sm:$0xff]  ;;  %v741_v36 = vld [vmem:[%s1509_s0 + $0x190] sm:$0xff]  ;;  %v739_v37 = vld [vmem:[%s1509_s0 + $0x180] sm:$0xff] }
  0x23   :  { %381 = vmatmul.f32.vlgmr.msra.gmra.mxu1 %v15_v54  ;;  %v740_v38 = vld [vmem:[%s1509_s0 + $0x188] sm:$0xff]  ;;  %v750_v39 = vld [vmem:[%s1509_s0 + $0x1d8] sm:$0xff]  ;;  %v745_v40 = vld [vmem:[%s1509_s0 + $0x1b0] sm:$0xff] }
  0x24   :  { %v743_v41 = vld [vmem:[%s1509_s0 + $0x1a0] sm:$0xff]  ;;  %v744_v42 = vld [vmem:[%s1509_s0 + $0x1a8] sm:$0xff]  ;;  %v754_v43 = vld [vmem:[%s1509_s0 + $0x1f8] sm:$0xff] }
  0x25   :  { %v749_v44 = vld [vmem:[%s1509_s0 + $0x1d0] sm:$0xff]  ;;  %v747_v45 = vld [vmem:[%s1509_s0 + $0x1c0] sm:$0xff]  ;;  %v748_v46 = vld [vmem:[%s1509_s0 + $0x1c8] sm:$0xff] }
  0x26   :  { %v758_v47 = vld [vmem:[%s1509_s0 + $0x218] sm:$0xff]  ;;  %v753_v48 = vld [vmem:[%s1509_s0 + $0x1f0] sm:$0xff]  ;;  %v751_v49 = vld [vmem:[%s1509_s0 + $0x1e0] sm:$0xff] }
  0x27   :  { %806 = vmatmul.msk.f32.gmra.mxu3 %vm179_vm0, %v29_v59  ;;  %v752_v50 = vld [vmem:[%s1509_s0 + $0x1e8] sm:$0xff]  ;;  %v762_v52 = vld [vmem:[%s1509_s0 + $0x238] sm:$0xff]  ;;  %v757_v53 = vld [vmem:[%s1509_s0 + $0x210] sm:$0xff] }
  0x29   :  { %485 = vmatmul.f32.gmra.mxu2 %v20_v56  ;;  %v755_v56 = vld [vmem:[%s1509_s0 + $0x200] sm:$0xff] }
  0x2a   :  { %283 = vmatmul.f32.gmra.mxu0 %v18_v57  ;;  %v756_v57 = vld [vmem:[%s1509_s0 + $0x208] sm:$0xff] }
  0x2b   :  { %384 = vmatmul.f32.gmra.mxu1 %v19_v58 }
  0x2f   :  { %807 = vmatmul.msk.f32.gmra.mxu3 %vm179_vm0, %v33_v63  ;;  %v761_v63 = vld [vmem:[%s1509_s0 + $0x230] sm:$0xff] }
  0x31   :  { %488 = vmatmul.f32.gmra.mxu2 %v24_v60  ;;  %v766_v60 = vld [vmem:[%s1509_s0 + $0x258] sm:$0xff] }
  0x32   :  { %286 = vmatmul.f32.gmra.mxu0 %v22_v61 }
  0x33   :  { %387 = vmatmul.f32.gmra.mxu1 %v23_v62 }
  0x37   :  { %808 = vmatmul.msk.f32.gmra.mxu3 %vm179_vm0, %v37_v3  ;;  %v759_v3 = vld [vmem:[%s1509_s0 + $0x220] sm:$0xff] }
  0x39   :  { %491 = vmatmul.f32.gmra.mxu2 %v28_v0 }
  0x3a   :  { %289 = vmatmul.f32.gmra.mxu0 %v26_v1 }
  0x3b   :  { %390 = vmatmul.f32.gmra.mxu1 %v27_v2 }
  0x3f   :  { %809 = vmatmul.msk.f32.gmra.mxu3 %vm179_vm0, %v41_v7  ;;  %v770_v7 = vld [vmem:[%s1509_s0 + $0x278] sm:$0xff] }
  0x41   :  { %494 = vmatmul.f32.gmra.mxu2 %v32_v4  ;;  %v760_v4 = vld [vmem:[%s1509_s0 + $0x228] sm:$0xff] }
  0x42   :  { %292 = vmatmul.f32.gmra.mxu0 %v30_v5 }
  0x43   :  { %393 = vmatmul.f32.gmra.mxu1 %v31_v6 }
  0x47   :  { %810 = vmatmul.msk.f32.gmra.mxu3 %vm179_vm0, %v722_v11 }
  0x49   :  { %497 = vmatmul.f32.gmra.mxu2 %v36_v8 }
  0x4a   :  { %295 = vmatmul.f32.gmra.mxu0 %v34_v9 }
  0x4b   :  { %396 = vmatmul.f32.gmra.mxu1 %v35_v10  ;;  %v765_v10 = vld [vmem:[%s1509_s0 + $0x250] sm:$0xff] }
  0x4f   :  { %811 = vmatmul.msk.f32.gmra.mxu3 %vm179_vm0, %v726_v15  ;;  %v764_v15 = vld [vmem:[%s1509_s0 + $0x248] sm:$0xff] }
  0x51   :  { %500 = vmatmul.f32.gmra.mxu2 %v40_v12 }
  0x52   :  { %298 = vmatmul.f32.gmra.mxu0 %v38_v13 }
  0x53   :  { %399 = vmatmul.f32.gmra.mxu1 %v39_v14  ;;  %v763_v14 = vld [vmem:[%s1509_s0 + $0x240] sm:$0xff] }
  0x57   :  { %812 = vmatmul.msk.f32.gmra.mxu3 %vm179_vm0, %v730_v19 }
  0x59   :  { %503 = vmatmul.f32.gmra.mxu2 %v721_v16 }
  0x5a   :  { %301 = vmatmul.f32.gmra.mxu0 %v719_v17 }
  0x5b   :  { %402 = vmatmul.f32.gmra.mxu1 %v720_v18  ;;  %v774_v18 = vld [vmem:[%s1509_s0 + $0x298] sm:$0xff] }
  0x5f   :  { %813 = vmatmul.msk.f32.gmra.mxu3 %vm179_vm0, %v734_v23 }
  0x61   :  { %506 = vmatmul.f32.gmra.mxu2 %v725_v20 }
  0x62   :  { %304 = vmatmul.f32.gmra.mxu0 %v723_v21  ;;  %v769_v21 = vld [vmem:[%s1509_s0 + $0x270] sm:$0xff] }
  0x63   :  { %405 = vmatmul.f32.gmra.mxu1 %v724_v22 }
  0x67   :  { %814 = vmatmul.msk.f32.gmra.mxu3 %vm179_vm0, %v738_v27 }
  0x69   :  { %509 = vmatmul.f32.gmra.mxu2 %v729_v24 }
  0x6a   :  { %307 = vmatmul.f32.gmra.mxu0 %v727_v25  ;;  %v767_v25 = vld [vmem:[%s1509_s0 + $0x260] sm:$0xff] }
  0x6b   :  { %408 = vmatmul.f32.gmra.mxu1 %v728_v26  ;;  %v768_v26 = vld [vmem:[%s1509_s0 + $0x268] sm:$0xff] }
  0x6f   :  { %815 = vmatmul.msk.f32.gmra.mxu3 %vm179_vm0, %v742_v31 }
  0x71   :  { %512 = vmatmul.f32.gmra.mxu2 %v733_v28 }
  0x72   :  { %310 = vmatmul.f32.gmra.mxu0 %v731_v29  ;;  %v778_v29 = vld [vmem:[%s1509_s0 + $0x2b8] sm:$0xff] }
  0x73   :  { %411 = vmatmul.f32.gmra.mxu1 %v732_v30 }
  0x77   :  { %816 = vmatmul.msk.f32.gmra.mxu3 %vm179_vm0, %v746_v35 }
  0x79   :  { %515 = vmatmul.f32.gmra.mxu2 %v737_v32  ;;  %v773_v32 = vld [vmem:[%s1509_s0 + $0x290] sm:$0xff] }
  0x7a   :  { %313 = vmatmul.f32.gmra.mxu0 %v735_v33 }
  0x7b   :  { %414 = vmatmul.f32.gmra.mxu1 %v736_v34 }
  0x7f   :  { %817 = vmatmul.msk.f32.gmra.mxu3 %vm179_vm0, %v750_v39 }
  0x81   :  { %518 = vmatmul.f32.gmra.mxu2 %v741_v36  ;;  %v771_v36 = vld [vmem:[%s1509_s0 + $0x280] sm:$0xff] }
  0x82   :  { %316 = vmatmul.f32.gmra.mxu0 %v739_v37  ;;  %v772_v37 = vld [vmem:[%s1509_s0 + $0x288] sm:$0xff] }
  0x83   :  { %417 = vmatmul.f32.gmra.mxu1 %v740_v38 }
  0x87   :  { %818 = vmatmul.msk.f32.gmra.mxu3 %vm179_vm0, %v754_v43  ;;  %v777_v43 = vld [vmem:[%s1509_s0 + $0x2b0] sm:$0xff] }
  0x89   :  { %521 = vmatmul.f32.gmra.mxu2 %v745_v40  ;;  %v782_v40 = vld [vmem:[%s1509_s0 + $0x2d8] sm:$0xff] }
  0x8a   :  { %319 = vmatmul.f32.gmra.mxu0 %v743_v41 }
  0x8b   :  { %420 = vmatmul.f32.gmra.mxu1 %v744_v42 }
  0x8f   :  { %819 = vmatmul.msk.f32.gmra.mxu3 %vm179_vm0, %v758_v47  ;;  %v775_v47 = vld [vmem:[%s1509_s0 + $0x2a0] sm:$0xff] }
  0x91   :  { %524 = vmatmul.f32.gmra.mxu2 %v749_v44 }
  0x92   :  { %322 = vmatmul.f32.gmra.mxu0 %v747_v45  ;;  %v584_v51 = vpop.f32.mrf.mxu3 }
  0x93   :  { %423 = vmatmul.f32.gmra.mxu1 %v748_v46 }
  0x97   :  { %820 = vmatmul.msk.f32.gmra.mxu3 %vm179_vm0, %v762_v52 }
  0x99   :  { %527 = vmatmul.f32.gmra.mxu2 %v753_v48  ;;  %v776_v48 = vld [vmem:[%s1509_s0 + $0x2a8] sm:$0xff] }
  0x9a   :  { %325 = vmatmul.f32.gmra.mxu0 %v751_v49  ;;  %v587_v58 = vpop.f32.mrf.mxu3 }
  0x9b   :  { %426 = vmatmul.f32.gmra.mxu1 %v752_v50 }
  0x9f   :  { %v281_v54 = vpop.f32.mrf.mxu0  ;;  %821 = vmatmul.msk.f32.gmra.mxu3 %vm179_vm0, %v766_v60 }
  0xa0   :  { %v382_v55 = vpop.f32.mrf.mxu1 }
  0xa1   :  { %530 = vmatmul.f32.gmra.mxu2 %v757_v53  ;;  %v383_v59 = vadd.f32 %v382_v55, %v281_v54  ;;  %v781_v54 = vld [vmem:[%s1509_s0 + $0x2d0] sm:$0xff] }
  0xa2   :  { %328 = vmatmul.f32.gmra.mxu0 %v755_v56  ;;  %v590_v5 = vpop.f32.mrf.mxu3 }
  0xa3   :  { %429 = vmatmul.f32.gmra.mxu1 %v756_v57 }
  0xa4   :  { %v483_v61 = vpop.f32.mrf.mxu2 }
  0xa5   :  { %v484_v62 = vadd.f32 %v483_v61, %v383_v59  ;;  %v780_v59 = vld [vmem:[%s1509_s0 + $0x2c8] sm:$0xff] }
  0xa7   :  { %v1234_v0 = vadd.f32 %v584_v51, %v484_v62  ;;  %v284_v1 = vpop.f32.mrf.mxu0  ;;  %822 = vmatmul.msk.f32.gmra.mxu3 %vm179_vm0, %v770_v7  ;;  %v786_v51 = vld [vmem:[%s1509_s0 + $0x2f8] sm:$0xff]  ;;  %v784_v7 = vld [vmem:[%s1509_s0 + $0x2e8] sm:$0xff] }
  0xa8   :  { %v385_v2 = vpop.f32.mrf.mxu1  ;;  %v790_v62 = vld [vmem:[%s1509_s0 + $0x318] sm:$0xff] }
  0xa9   :  { %533 = vmatmul.f32.gmra.mxu2 %v761_v63  ;;  %v386_v6 = vadd.f32 %v385_v2, %v284_v1  ;;  %v785_v2 = vld [vmem:[%s1509_s0 + $0x2f0] sm:$0xff] }
  0xaa   :  { %331 = vmatmul.f32.gmra.mxu0 %v759_v3  ;;  %v593_v16 = vpop.f32.mrf.mxu3 }
  0xab   :  { %432 = vmatmul.f32.gmra.mxu1 %v760_v4 }
  0xac   :  { %v486_v8 = vpop.f32.mrf.mxu2 }
  0xad   :  { %v487_v9 = vadd.f32 %v486_v8, %v386_v6  ;;  %v783_v6 = vld [vmem:[%s1509_s0 + $0x2e0] sm:$0xff] }
  0xaf   :  { %v1249_v11 = vadd.f32 %v587_v58, %v487_v9  ;;  %v287_v12 = vpop.f32.mrf.mxu0  ;;  %823 = vmatmul.msk.f32.gmra.mxu3 %vm179_vm0, %v774_v18  ;;  %v779_v58 = vld [vmem:[%s1509_s0 + $0x2c0] sm:$0xff] }
  0xb0   :  { %v388_v13 = vpop.f32.mrf.mxu1  ;;  %v787_v18 = vld [vmem:[%s1509_s0 + $0x300] sm:$0xff] }
  0xb1   :  { %536 = vmatmul.f32.gmra.mxu2 %v765_v10  ;;  %v389_v17 = vadd.f32 %v388_v13, %v287_v12  ;;  %v794_v10 = vld [vmem:[%s1509_s0 + $0x338] sm:$0xff] }
  0xb2   :  { %334 = vmatmul.f32.gmra.mxu0 %v763_v14  ;;  %v596_v27 = vpop.f32.mrf.mxu3  ;;  %v789_v14 = vld [vmem:[%s1509_s0 + $0x310] sm:$0xff] }
  0xb3   :  { %435 = vmatmul.f32.gmra.mxu1 %v764_v15 }
  0xb4   :  { %v489_v19 = vpop.f32.mrf.mxu2 }
  0xb5   :  { %v490_v20 = vadd.f32 %v489_v19, %v389_v17  ;;  %v788_v19 = vld [vmem:[%s1509_s0 + $0x308] sm:$0xff] }
  0xb7   :  { %v1264_v22 = vadd.f32 %v590_v5, %v490_v20  ;;  %v290_v23 = vpop.f32.mrf.mxu0  ;;  %824 = vmatmul.msk.f32.gmra.mxu3 %vm179_vm0, %v778_v29 }
  0xb8   :  { %v391_v24 = vpop.f32.mrf.mxu1 }
  0xb9   :  { %539 = vmatmul.f32.gmra.mxu2 %v769_v21  ;;  %v392_v28 = vadd.f32 %v391_v24, %v290_v23  ;;  %v798_v24 = vld [vmem:[%s1509_s0 + $0x358] sm:$0xff] }
  0xba   :  { %337 = vmatmul.f32.gmra.mxu0 %v767_v25  ;;  %v599_v39 = vpop.f32.mrf.mxu3 }
  0xbb   :  { %438 = vmatmul.f32.gmra.mxu1 %v768_v26 }
  0xbc   :  { %v492_v30 = vpop.f32.mrf.mxu2 }
  0xbd   :  { %v493_v31 = vadd.f32 %v492_v30, %v392_v28 }
  0xbf   :  { %v1279_v33 = vadd.f32 %v593_v16, %v493_v31  ;;  %v293_v34 = vpop.f32.mrf.mxu0  ;;  %825 = vmatmul.msk.f32.gmra.mxu3 %vm179_vm0, %v782_v40  ;;  %v791_v31 = vld [vmem:[%s1509_s0 + $0x320] sm:$0xff]  ;;  %v797_v40 = vld [vmem:[%s1509_s0 + $0x350] sm:$0xff] }
  0xc0   :  { %v394_v35 = vpop.f32.mrf.mxu1 }
  0xc1   :  { %v395_v38 = vadd.f32 %v394_v35, %v293_v34  ;;  %542 = vmatmul.f32.gmra.mxu2 %v773_v32  ;;  %v792_v32 = vld [vmem:[%s1509_s0 + $0x328] sm:$0xff] }
  0xc2   :  { %340 = vmatmul.f32.gmra.mxu0 %v771_v36  ;;  %v602_v50 = vpop.f32.mrf.mxu3 }
  0xc3   :  { %441 = vmatmul.f32.gmra.mxu1 %v772_v37  ;;  %v802_v37 = vld [vmem:[%s1509_s0 + $0x378] sm:$0xff] }
  0xc4   :  { %v495_v41 = vpop.f32.mrf.mxu2 }
  0xc5   :  { %v496_v42 = vadd.f32 %v495_v41, %v395_v38 }
  0xc7   :  { %v1294_v44 = vadd.f32 %v596_v27, %v496_v42  ;;  %v296_v45 = vpop.f32.mrf.mxu0  ;;  %826 = vmatmul.msk.f32.gmra.mxu3 %vm179_vm0, %v786_v51  ;;  %v793_v27 = vld [vmem:[%s1509_s0 + $0x330] sm:$0xff] }
  0xc8   :  { %v397_v46 = vpop.f32.mrf.mxu1 }
  0xc9   :  { %v398_v49 = vadd.f32 %v397_v46, %v296_v45  ;;  %545 = vmatmul.f32.gmra.mxu2 %v777_v43  ;;  %v795_v45 = vld [vmem:[%s1509_s0 + $0x340] sm:$0xff]  ;;  %v796_v46 = vld [vmem:[%s1509_s0 + $0x348] sm:$0xff] }
  0xca   :  { %343 = vmatmul.f32.gmra.mxu0 %v775_v47  ;;  %v605_v61 = vpop.f32.mrf.mxu3 }
  0xcb   :  { %444 = vmatmul.f32.gmra.mxu1 %v776_v48 }
  0xcc   :  { %v498_v52 = vpop.f32.mrf.mxu2 }
  0xcd   :  { %v499_v53 = vadd.f32 %v498_v52, %v398_v49  ;;  %v801_v52 = vld [vmem:[%s1509_s0 + $0x370] sm:$0xff] }
  0xcf   :  { %v1309_v55 = vadd.f32 %v599_v39, %v499_v53  ;;  %v299_v56 = vpop.f32.mrf.mxu0  ;;  %827 = vmatmul.msk.f32.gmra.mxu3 %vm179_vm0, %v790_v62 }
  0xd0   :  { %v400_v57 = vpop.f32.mrf.mxu1 }
  0xd1   :  { %v401_v60 = vadd.f32 %v400_v57, %v299_v56  ;;  %548 = vmatmul.f32.gmra.mxu2 %v781_v54  ;;  %v799_v57 = vld [vmem:[%s1509_s0 + $0x360] sm:$0xff] }
  0xd2   :  { %346 = vmatmul.f32.gmra.mxu0 %v779_v58  ;;  %v608_v9 = vpop.f32.mrf.mxu3  ;;  %v800_v58 = vld [vmem:[%s1509_s0 + $0x368] sm:$0xff] }
  0xd3   :  { %447 = vmatmul.f32.gmra.mxu1 %v780_v59 }
  0xd4   :  { %v501_v63 = vpop.f32.mrf.mxu2 }
  0xd5   :  { %v502_v1 = vadd.f32 %v501_v63, %v401_v60 }
  0xd7   :  { %v1324_v3 = vadd.f32 %v602_v50, %v502_v1  ;;  %v302_v4 = vpop.f32.mrf.mxu0  ;;  %828 = vmatmul.msk.f32.gmra.mxu3 %vm179_vm0, %v794_v10 }
  0xd8   :  { %v403_v5 = vpop.f32.mrf.mxu1 }
  0xd9   :  { %v404_v8 = vadd.f32 %v403_v5, %v302_v4  ;;  %551 = vmatmul.f32.gmra.mxu2 %v785_v2 }
  0xda   :  { %349 = vmatmul.f32.gmra.mxu0 %v783_v6  ;;  %v611_v21 = vpop.f32.mrf.mxu3 }
  0xdb   :  { %450 = vmatmul.f32.gmra.mxu1 %v784_v7 }
  0xdc   :  { %v504_v12 = vpop.f32.mrf.mxu2 }
  0xdd   :  { %v505_v13 = vadd.f32 %v504_v12, %v404_v8 }
  0xdf   :  { %v1339_v15 = vadd.f32 %v605_v61, %v505_v13  ;;  %v305_v16 = vpop.f32.mrf.mxu0  ;;  %829 = vmatmul.msk.f32.gmra.mxu3 %vm179_vm0, %v798_v24 }
  0xe0   :  { %v406_v17 = vpop.f32.mrf.mxu1 }
  0xe1   :  { %v407_v20 = vadd.f32 %v406_v17, %v305_v16  ;;  %v668_v23 = vmax.f32 %v1234_v0, %v1339_v15  ;;  %554 = vmatmul.f32.gmra.mxu2 %v789_v14 }
  0xe2   :  { %352 = vmatmul.f32.gmra.mxu0 %v787_v18  ;;  %v614_v35 = vpop.f32.mrf.mxu3 }
  0xe3   :  { %453 = vmatmul.f32.gmra.mxu1 %v788_v19 }
  0xe4   :  { %v507_v25 = vpop.f32.mrf.mxu2 }
  0xe5   :  { %v508_v26 = vadd.f32 %v507_v25, %v407_v20 }
  0xe7   :  { %v1356_v28 = vadd.f32 %v608_v9, %v508_v26  ;;  %v308_v29 = vpop.f32.mrf.mxu0  ;;  %830 = vmatmul.msk.f32.gmra.mxu3 %vm179_vm0, %v802_v37  ;;  %v1437_v26 = vld [vmem:[%s1510_s2] ss:$0 sm:$0xff] }
  0xe8   :  { %v409_v30 = vpop.f32.mrf.mxu1 }
  0xe9   :  { %v410_v34 = vadd.f32 %v409_v30, %v308_v29  ;;  %v669_v36 = vmax.f32 %v1249_v11, %v1356_v28  ;;  %557 = vmatmul.f32.gmra.mxu2 %v793_v27 }
  0xea   :  { %355 = vmatmul.f32.gmra.mxu0 %v791_v31  ;;  %v617_v48 = vpop.f32.mrf.mxu3 }
  0xeb   :  { %456 = vmatmul.f32.gmra.mxu1 %v792_v32 }
  0xec   :  { %v510_v38 = vpop.f32.mrf.mxu2 }
  0xed   :  { %v511_v39 = vadd.f32 %v510_v38, %v410_v34 }
  0xef   :  { %v1373_v41 = vadd.f32 %v611_v21, %v511_v39  ;;  %v311_v42 = vpop.f32.mrf.mxu0 }
  0xf0   :  { %v412_v43 = vpop.f32.mrf.mxu1 }
  0xf1   :  { %v413_v47 = vadd.f32 %v412_v43, %v311_v42  ;;  %v670_v49 = vmax.f32 %v1264_v22, %v1373_v41  ;;  %560 = vmatmul.f32.gmra.mxu2 %v797_v40 }
  0xf2   :  { %358 = vmatmul.f32.gmra.mxu0 %v795_v45  ;;  %v620_v60 = vpop.f32.mrf.mxu3 }
  0xf3   :  { %459 = vmatmul.f32.gmra.mxu1 %v796_v46 }
  0xf4   :  { %v513_v50 = vpop.f32.mrf.mxu2 }
  0xf5   :  { %v514_v51 = vadd.f32 %v513_v50, %v413_v47 }
  0xf7   :  { %v1386_v53 = vadd.f32 %v614_v35, %v514_v51  ;;  %v314_v54 = vpop.f32.mrf.mxu0 }
  0xf8   :  { %v415_v56 = vpop.f32.mrf.mxu1 }
  0xf9   :  { %v416_v59 = vadd.f32 %v415_v56, %v314_v54  ;;  %v671_v61 = vmax.f32 %v1279_v33, %v1386_v53  ;;  %563 = vmatmul.f32.gmra.mxu2 %v801_v52 }
  0xfa   :  { %361 = vmatmul.f32.gmra.mxu0 %v799_v57  ;;  %v623_v6 = vpop.f32.mrf.mxu3 }
  0xfb   :  { %462 = vmatmul.f32.gmra.mxu1 %v800_v58 }
  0xfc   :  { %v516_v62 = vpop.f32.mrf.mxu2 }
  0xfd   :  { %v517_v63 = vadd.f32 %v516_v62, %v416_v59 }
  0xff   :  { %v1396_v1 = vadd.f32 %v617_v48, %v517_v63  ;;  %v317_v2 = vpop.f32.mrf.mxu0 }
 0x100   :  { %v418_v4 = vpop.f32.mrf.mxu1 }
 0x101   :  { %v419_v5 = vadd.f32 %v418_v4, %v317_v2  ;;  %v672_v7 = vmax.f32 %v1294_v44, %v1396_v1 }
 0x102   :  { %v626_v16 = vpop.f32.mrf.mxu3 }
 0x104   :  { %v519_v8 = vpop.f32.mrf.mxu2 }
 0x105   :  { %v520_v9 = vadd.f32 %v519_v8, %v419_v5 }
 0x107   :  { %v1400_v10 = vadd.f32 %v620_v60, %v520_v9  ;;  %v320_v12 = vpop.f32.mrf.mxu0 }
 0x108   :  { %v421_v13 = vpop.f32.mrf.mxu1 }
 0x109   :  { %v422_v14 = vadd.f32 %v421_v13, %v320_v12 }
 0x10a   :  { %v629_v25 = vpop.f32.mrf.mxu3 }
 0x10c   :  { %v522_v18 = vpop.f32.mrf.mxu2 }
 0x10d   :  { %v523_v19 = vadd.f32 %v522_v18, %v422_v14 }
 0x10f   :  { %v1404_v20 = vadd.f32 %v623_v6, %v523_v19  ;;  %v323_v21 = vpop.f32.mrf.mxu0 }
 0x110   :  { %v424_v24 = vpop.f32.mrf.mxu1 }
 0x111   :  { %v425_v60 = vadd.f32 %v424_v24, %v323_v21 }
 0x112   :  { %v632_v31 = vpop.f32.mrf.mxu3 }
 0x114   :  { %v525_v27 = vpop.f32.mrf.mxu2 }
 0x115   :  { %v526_v5 = vadd.f32 %v525_v27, %v425_v60 }
 0x117   :  { %v326_v29 = vpop.f32.mrf.mxu0  ;;  %v627_v9 = vadd.f32 %v626_v16, %v526_v5 }
 0x118   :  { %v427_v30 = vpop.f32.mrf.mxu1 }
 0x119   :  { %v428_v12 = vadd.f32 %v427_v30, %v326_v29 }
 0x11a   :  { %v1408_v37 = vpop.f32.mrf.mxu3 }
 0x11c   :  { %v528_v32 = vpop.f32.mrf.mxu2 }
 0x11d   :  { %v529_v21 = vadd.f32 %v528_v32, %v428_v12 }
 0x11f   :  { %v329_v34 = vpop.f32.mrf.mxu0  ;;  %v630_v30 = vadd.f32 %v629_v25, %v529_v21 }
 0x120   :  { %v430_v35 = vpop.f32.mrf.mxu1 }
 0x122   :  { %v1410_v42 = vpop.f32.mrf.mxu3 }
 0x124   :  { %v531_v38 = vpop.f32.mrf.mxu2 }
 0x127   :  { %v332_v39 = vpop.f32.mrf.mxu0 }
 0x128   :  { %v433_v40 = vpop.f32.mrf.mxu1 }
 0x12a   :  { %v1416_v47 = vpop.f32.mrf.mxu3 }
 0x12c   :  { %v534_v43 = vpop.f32.mrf.mxu2 }
 0x12f   :  { %v1412_v45 = vpop.f32.mrf.mxu0 }
 0x130   :  { %v1414_v46 = vpop.f32.mrf.mxu1 }
 0x132   :  { %v1424_v52 = vpop.f32.mrf.mxu3 }
 0x134   :  { %v1418_v48 = vpop.f32.mrf.mxu2 }
 0x137   :  { %v1420_v50 = vpop.f32.mrf.mxu0 }
 0x138   :  { %v1422_v51 = vpop.f32.mrf.mxu1 }
 0x13a   :  { %v647_v58 = vpop.f32.mrf.mxu3 }
 0x13c   :  { %v1426_v54 = vpop.f32.mrf.mxu2 }
 0x13f   :  { %v1428_v56 = vpop.f32.mrf.mxu0 }
 0x140   :  { %v1430_v57 = vpop.f32.mrf.mxu1 }
 0x142   :  { %v650_v4 = vpop.f32.mrf.mxu3 }
 0x144   :  { %v1432_v59 = vpop.f32.mrf.mxu2 }
 0x147   :  { %v344_v62 = vpop.f32.mrf.mxu0 }
 0x148   :  { %v445_v63 = vpop.f32.mrf.mxu1 }
 0x149   :  { %v446_v2 = vadd.f32 %v445_v63, %v344_v62 }
 0x14a   :  { %v653_v60 = vpop.f32.mrf.mxu3 }
 0x14c   :  { %v546_v6 = vpop.f32.mrf.mxu2 }
 0x14d   :  { %v547_v8 = vadd.f32 %v546_v6, %v446_v2  ;;  %v434_v6 = vadd.f32 %v433_v40, %v332_v39 }
 0x14f   :  { %v648_v13 = vadd.f32 %v647_v58, %v547_v8  ;;  %v347_v14 = vpop.f32.mrf.mxu0  ;;  %v431_v58 = vadd.f32 %v430_v35, %v329_v34  ;;  %v535_v11 = vadd.f32 %v534_v43, %v434_v6 }
 0x150   :  { %v448_v18 = vpop.f32.mrf.mxu1 }
 0x151   :  { %v675_v19 = vmax.f32 %v627_v9, %v648_v13  ;;  %v449_v17 = vadd.f32 %v448_v18, %v347_v14  ;;  %v532_v15 = vadd.f32 %v531_v38, %v431_v58  ;;  %v636_v40 = vadd.f32 %v1408_v37, %v535_v11 }
 0x152   :  { %v656_v35 = vpop.f32.mrf.mxu3  ;;  %v437_v18 = vadd.f32 %v1414_v46, %v1412_v45 }
 0x153   :  { %v682_v24 = vmax.f32 %v668_v23, %v675_v19 }
 0x154   :  { %v549_v27 = vpop.f32.mrf.mxu2 }
 0x155   :  { %v693_v16 = vadd.f32 %v1437_v26, %v682_v24  ;;  %v550_v29 = vadd.f32 %v549_v27, %v449_v17 }
 0x157   :  { %v700_v62 = vmax.f32 %v693_v16, 0.0  ;;  %v651_v63 = vadd.f32 %v650_v4, %v550_v29  ;;  %v350_v2 = vpop.f32.mrf.mxu0  ;;  %v633_v4 = vadd.f32 %v632_v31, %v532_v15  ;;  %v440_v29 = vadd.f32 %v1422_v51, %v1420_v50 }
 0x158   :  { %v451_v5 = vpop.f32.mrf.mxu1 }
 0x159   :  { %708 = vst.msk [vmem:[%s1511_s3] sm:$0xff] %vm707_vm1, %v700_v62  ;;  %v676_v32 = vmax.f32 %v630_v30, %v651_v63  ;;  %v452_v0 = vadd.f32 %v451_v5, %v350_v2 }
 0x15b   :  { %v683_v23 = vmax.f32 %v669_v36, %v676_v32  ;;  %v443_v32 = vadd.f32 %v1430_v57, %v1428_v56 }
 0x15c   :  { %v552_v17 = vpop.f32.mrf.mxu2 }
 0x15d   :  { %v694_v25 = vadd.f32 %v1437_v26, %v683_v23  ;;  %v553_v34 = vadd.f32 %v552_v17, %v452_v0 }
 0x15f   :  { %v701_v8 = vmax.f32 %v694_v25, 0.0  ;;  %v654_v9 = vadd.f32 %v653_v60, %v553_v34  ;;  %v353_v12 = vpop.f32.mrf.mxu0  ;;  %v659_v60 = vpop.f32.mrf.mxu3 }
 0x160   :  { %v454_v13 = vpop.f32.mrf.mxu1 }
 0x161   :  { %709 = vst.msk [vmem:[%s1511_s3 + $0x8] sm:$0xff] %vm707_vm1, %v701_v8  ;;  %v677_v38 = vmax.f32 %v633_v4, %v654_v9  ;;  %v455_v14 = vadd.f32 %v454_v13, %v353_v12 }
 0x163   :  { %v684_v28 = vmax.f32 %v670_v49, %v677_v38  ;;  %v538_v49 = vadd.f32 %v1418_v48, %v437_v18  ;;  %v541_v48 = vadd.f32 %v1426_v54, %v440_v29  ;;  %v1512_v54 = vmax.f32 %v1309_v55, %v1400_v10 }
 0x164   :  { %v555_v36 = vpop.f32.mrf.mxu2 }
 0x165   :  { %v695_v31 = vadd.f32 %v1437_v26, %v684_v28  ;;  %v556_v39 = vadd.f32 %v555_v36, %v455_v14  ;;  %v639_v16 = vadd.f32 %v1410_v42, %v538_v49  ;;  %v642_v5 = vadd.f32 %v1416_v47, %v541_v48 }
 0x167   :  { %v702_v19 = vmax.f32 %v695_v31, 0.0  ;;  %v657_v21 = vadd.f32 %v656_v35, %v556_v39  ;;  %v356_v24 = vpop.f32.mrf.mxu0 }
 0x168   :  { %v457_v27 = vpop.f32.mrf.mxu1 }
 0x169   :  { %710 = vst.msk [vmem:[%s1511_s3 + $0x10] sm:$0xff] %vm707_vm1, %v702_v19  ;;  %v678_v22 = vmax.f32 %v636_v40, %v657_v21  ;;  %v458_v41 = vadd.f32 %v457_v27, %v356_v24 }
 0x16b   :  { %v685_v37 = vmax.f32 %v671_v61, %v678_v22  ;;  %v662_v61 = vpop.f32.mrf.mxu3 }
 0x16c   :  { %v558_v43 = vpop.f32.mrf.mxu2 }
 0x16d   :  { %v696_v45 = vadd.f32 %v1437_v26, %v685_v37  ;;  %v559_v46 = vadd.f32 %v558_v43, %v458_v41 }
 0x16f   :  { %v703_v30 = vmax.f32 %v696_v45, 0.0  ;;  %v660_v58 = vadd.f32 %v659_v60, %v559_v46  ;;  %v359_v62 = vpop.f32.mrf.mxu0 }
 0x170   :  { %v460_v63 = vpop.f32.mrf.mxu1 }
 0x171   :  { %711 = vst.msk [vmem:[%s1511_s3 + $0x18] sm:$0xff] %vm707_vm1, %v703_v30  ;;  %v679_v33 = vmax.f32 %v639_v16, %v660_v58  ;;  %v461_v53 = vadd.f32 %v460_v63, %v359_v62 }
 0x173   :  { %v686_v42 = vmax.f32 %v672_v7, %v679_v33  ;;  %v544_v7 = vadd.f32 %v1432_v59, %v443_v32  ;;  %v665_v34 = vpop.f32.mrf.mxu3  ;;  %v1513_v59 = vmax.f32 %v1324_v3, %v1404_v20 }
 0x174   :  { %v561_v2 = vpop.f32.mrf.mxu2 }
 0x175   :  { %v697_v50 = vadd.f32 %v1437_v26, %v686_v42  ;;  %v562_v51 = vadd.f32 %v561_v2, %v461_v53  ;;  %v645_v35 = vadd.f32 %v1424_v52, %v544_v7 }
 0x177   :  { %v704_v0 = vmax.f32 %v697_v50, 0.0  ;;  %v663_v15 = vadd.f32 %v662_v61, %v562_v51  ;;  %v362_v23 = vpop.f32.mrf.mxu0 }
 0x178   :  { %v463_v17 = vpop.f32.mrf.mxu1 }
 0x179   :  { %712 = vst.msk [vmem:[%s1511_s3 + $0x20] sm:$0xff] %vm707_vm1, %v704_v0  ;;  %v680_v44 = vmax.f32 %v642_v5, %v663_v15  ;;  %v464_v1 = vadd.f32 %v463_v17, %v362_v23 }
 0x17b   :  { %v687_v47 = vmax.f32 %v1512_v54, %v680_v44 }
 0x17c   :  { %v564_v25 = vpop.f32.mrf.mxu2 }
 0x17d   :  { %v698_v56 = vadd.f32 %v1437_v26, %v687_v47  ;;  %v565_v57 = vadd.f32 %v564_v25, %v464_v1 }
 0x17f   :  { %v705_v4 = vmax.f32 %v698_v56, 0.0  ;;  %v666_v6 = vadd.f32 %v665_v34, %v565_v57 }
 0x181   :  { %713 = vst.msk [vmem:[%s1511_s3 + $0x28] sm:$0xff] %vm707_vm1, %v705_v4  ;;  %v681_v8 = vmax.f32 %v645_v35, %v666_v6 }
 0x183   :  { %v688_v55 = vmax.f32 %v1513_v59, %v681_v8 }
 0x185   :  { %v699_v10 = vadd.f32 %v1437_v26, %v688_v55 }
 0x187   :  { %v706_v9 = vmax.f32 %v699_v10, 0.0 }
 0x189   :  { %714 = vst.msk [vmem:[%s1511_s3 + $0x30] sm:$0xff] %vm707_vm1, %v706_v9 }

// kernel: lenet_forward.5
= control target key start
LH: loop header
LB: loop body
LE: loop exit
PB: predicated region body
PF: predicated region fallthrough
CT: control target
= control target key end

     0   :  { %vm137_vm0 = vcmask 261120   ;;  %vm345_vm1 = vcmask 1043456   ;;  %vm301_vm2 = vcmask 982016   ;;  %vm341_vm3 = vcmask 687104   ;;  %s833_s1 = inlined_call_operand.vmem [shape: f32[800,120], index: 1, kind: input, shape index: {}]   ;;  %s834_s0 = inlined_call_operand.vmem [shape: f32[8,800], index: 0, kind: input, shape index: {}]   ;;  %s835_s2 = inlined_call_operand.vmem [shape: f32[1,120], index: 2, kind: input, shape index: {}]   ;;  %s836_s3 = inlined_call_operand.vmem [shape: f32[120,84], index: 3, kind: input, shape index: {}]   ;;  %s837_s4 = inlined_call_operand.vmem [shape: f32[1,84], index: 4, kind: input, shape index: {}]   ;;  %s838_s5 = inlined_call_operand.vmem [shape: f32[84,10], index: 5, kind: input, shape index: {}]   ;;  %s839_s6 = inlined_call_operand.vmem [shape: f32[1,10], index: 6, kind: input, shape index: {}]   ;;  %s840_s7 = inlined_call_operand.vmem [shape: f32[8,10], index: 7, kind: output, shape index: {}]  }
   0x1   :  { %v48_v0 = vld [vmem:[%s833_s1 + $0x78] sm:$0xff]  ;;  %v47_v1 = vld [vmem:[%s833_s1 + $0x70] sm:$0xff]  ;;  %v46_v4 = vld [vmem:[%s833_s1 + $0x68] sm:$0xff]  ;;  %vm369_vm4 = vcmask 80896  }
   0x2   :  { %v64_v2 = vld [vmem:[%s833_s1 + $0xf8] sm:$0xff]  ;;  %141 = vmatpush.msra.mxu0 %v48_v0  ;;  %v63_v3 = vld [vmem:[%s833_s1 + $0xf0] sm:$0xff]  ;;  %v62_v5 = vld [vmem:[%s833_s1 + $0xe8] sm:$0xff] }
   0x3   :  { %161 = vmatpush.msra.mxu1 %v64_v2  ;;  %v45_v6 = vld [vmem:[%s833_s1 + $0x60] sm:$0xff]  ;;  %v44_v8 = vld [vmem:[%s833_s1 + $0x58] sm:$0xff]  ;;  %v43_v10 = vld [vmem:[%s833_s1 + $0x50] sm:$0xff] }
   0x4   :  { %142 = vmatpush.msra.mxu0 %v47_v1  ;;  %v61_v7 = vld [vmem:[%s833_s1 + $0xe0] sm:$0xff]  ;;  %v60_v9 = vld [vmem:[%s833_s1 + $0xd8] sm:$0xff]  ;;  %v59_v12 = vld [vmem:[%s833_s1 + $0xd0] sm:$0xff] }
   0x5   :  { %162 = vmatpush.msra.mxu1 %v63_v3  ;;  %v80_v11 = vld [vmem:[%s833_s1 + $0x178] sm:$0xff]  ;;  %v79_v13 = vld [vmem:[%s833_s1 + $0x170] sm:$0xff]  ;;  %v78_v15 = vld [vmem:[%s833_s1 + $0x168] sm:$0xff] }
   0x6   :  { %143 = vmatpush.msra.mxu0 %v46_v4  ;;  %181 = vmatpush.msra.mxu2 %v80_v11  ;;  %v96_v14 = vld [vmem:[%s833_s1 + $0x1f8] sm:$0xff]  ;;  %v95_v16 = vld [vmem:[%s833_s1 + $0x1f0] sm:$0xff]  ;;  %v42_v17 = vld [vmem:[%s833_s1 + $0x48] sm:$0xff] }
   0x7   :  { %163 = vmatpush.msra.mxu1 %v62_v5  ;;  %v58_v18 = vld [vmem:[%s833_s1 + $0xc8] sm:$0xff]  ;;  %201 = vmatpush.msra.mxu3 %v96_v14  ;;  %v77_v19 = vld [vmem:[%s833_s1 + $0x160] sm:$0xff]  ;;  %v76_v23 = vld [vmem:[%s833_s1 + $0x158] sm:$0xff] }
   0x8   :  { %144 = vmatpush.msra.mxu0 %v45_v6  ;;  %182 = vmatpush.msra.mxu2 %v79_v13  ;;  %v94_v20 = vld [vmem:[%s833_s1 + $0x1e8] sm:$0xff]  ;;  %v41_v21 = vld [vmem:[%s833_s1 + $0x40] sm:$0xff]  ;;  %v40_v25 = vld [vmem:[%s833_s1 + $0x38] sm:$0xff] }
   0x9   :  { %164 = vmatpush.msra.mxu1 %v61_v7  ;;  %v57_v22 = vld [vmem:[%s833_s1 + $0xc0] sm:$0xff]  ;;  %202 = vmatpush.msra.mxu3 %v95_v16  ;;  %v56_v26 = vld [vmem:[%s833_s1 + $0xb8] sm:$0xff]  ;;  %v75_v27 = vld [vmem:[%s833_s1 + $0x150] sm:$0xff] }
   0xa   :  { %145 = vmatpush.msra.mxu0 %v44_v8  ;;  %183 = vmatpush.msra.mxu2 %v78_v15  ;;  %v93_v24 = vld [vmem:[%s833_s1 + $0x1e0] sm:$0xff]  ;;  %v92_v28 = vld [vmem:[%s833_s1 + $0x1d8] sm:$0xff]  ;;  %v39_v29 = vld [vmem:[%s833_s1 + $0x30] sm:$0xff] }
   0xb   :  { %165 = vmatpush.msra.mxu1 %v60_v9  ;;  %203 = vmatpush.msra.mxu3 %v94_v20  ;;  %v55_v30 = vld [vmem:[%s833_s1 + $0xb0] sm:$0xff]  ;;  %v74_v31 = vld [vmem:[%s833_s1 + $0x148] sm:$0xff]  ;;  %v73_v35 = vld [vmem:[%s833_s1 + $0x140] sm:$0xff] }
   0xc   :  { %146 = vmatpush.msra.mxu0 %v43_v10  ;;  %184 = vmatpush.msra.mxu2 %v77_v19  ;;  %v91_v32 = vld [vmem:[%s833_s1 + $0x1d0] sm:$0xff]  ;;  %v38_v33 = vld [vmem:[%s833_s1 + $0x28] sm:$0xff]  ;;  %v37_v37 = vld [vmem:[%s833_s1 + $0x20] sm:$0xff] }
   0xd   :  { %166 = vmatpush.msra.mxu1 %v59_v12  ;;  %204 = vmatpush.msra.mxu3 %v93_v24  ;;  %v54_v34 = vld [vmem:[%s833_s1 + $0xa8] sm:$0xff]  ;;  %v53_v38 = vld [vmem:[%s833_s1 + $0xa0] sm:$0xff]  ;;  %v72_v39 = vld [vmem:[%s833_s1 + $0x138] sm:$0xff] }
   0xe   :  { %147 = vmatpush.msra.mxu0 %v42_v17  ;;  %185 = vmatpush.msra.mxu2 %v76_v23  ;;  %v90_v36 = vld [vmem:[%s833_s1 + $0x1c8] sm:$0xff]  ;;  %v89_v40 = vld [vmem:[%s833_s1 + $0x1c0] sm:$0xff]  ;;  %v36_v41 = vld [vmem:[%s833_s1 + $0x18] sm:$0xff] }
   0xf   :  { %167 = vmatpush.msra.mxu1 %v58_v18  ;;  %205 = vmatpush.msra.mxu3 %v92_v28  ;;  %v52_v42 = vld [vmem:[%s833_s1 + $0x98] sm:$0xff]  ;;  %v71_v43 = vld [vmem:[%s833_s1 + $0x130] sm:$0xff]  ;;  %v70_v47 = vld [vmem:[%s833_s1 + $0x128] sm:$0xff] }
  0x10   :  { %148 = vmatpush.msra.mxu0 %v41_v21  ;;  %186 = vmatpush.msra.mxu2 %v75_v27  ;;  %v88_v44 = vld [vmem:[%s833_s1 + $0x1b8] sm:$0xff]  ;;  %v35_v45 = vld [vmem:[%s833_s1 + $0x10] sm:$0xff]  ;;  %v34_v49 = vld [vmem:[%s833_s1 + $0x8] sm:$0xff] }
  0x11   :  { %168 = vmatpush.msra.mxu1 %v57_v22  ;;  %206 = vmatpush.msra.mxu3 %v91_v32  ;;  %v51_v46 = vld [vmem:[%s833_s1 + $0x90] sm:$0xff]  ;;  %v50_v50 = vld [vmem:[%s833_s1 + $0x88] sm:$0xff]  ;;  %v69_v51 = vld [vmem:[%s833_s1 + $0x120] sm:$0xff] }
  0x12   :  { %149 = vmatpush.msra.mxu0 %v40_v25  ;;  %187 = vmatpush.msra.mxu2 %v74_v31  ;;  %v87_v48 = vld [vmem:[%s833_s1 + $0x1b0] sm:$0xff]  ;;  %v86_v52 = vld [vmem:[%s833_s1 + $0x1a8] sm:$0xff]  ;;  %v33_v53 = vld [vmem:[%s833_s1] sm:$0xff] }
  0x13   :  { %169 = vmatpush.msra.mxu1 %v56_v26  ;;  %207 = vmatpush.msra.mxu3 %v90_v36  ;;  %v49_v54 = vld [vmem:[%s833_s1 + $0x80] sm:$0xff]  ;;  %v112_v55 = vld [vmem:[%s833_s1 + $0x278] sm:$0xff]  ;;  %v111_v59 = vld [vmem:[%s833_s1 + $0x270] sm:$0xff] }
  0x14   :  { %150 = vmatpush.msra.mxu0 %v39_v29  ;;  %188 = vmatpush.msra.mxu2 %v73_v35  ;;  %v128_v56 = vld [vmem:[%s833_s1 + $0x2f8] sm:$0xff]  ;;  %v85_v58 = vld [vmem:[%s833_s1 + $0x1a0] sm:$0xff]  ;;  %v127_v60 = vld [vmem:[%s833_s1 + $0x2f0] sm:$0xff] }
  0x15   :  { %170 = vmatpush.msra.mxu1 %v55_v30  ;;  %208 = vmatpush.msra.mxu3 %v89_v40  ;;  %v68_v57 = vld [vmem:[%s833_s1 + $0x118] sm:$0xff]  ;;  %v67_v61 = vld [vmem:[%s833_s1 + $0x110] sm:$0xff]  ;;  %v110_v63 = vld [vmem:[%s833_s1 + $0x268] sm:$0xff] }
  0x16   :  { %151 = vmatpush.msra.mxu0 %v38_v33  ;;  %189 = vmatpush.msra.mxu2 %v72_v39  ;;  %v84_v62 = vld [vmem:[%s833_s1 + $0x198] sm:$0xff]  ;;  %v126_v0 = vld [vmem:[%s833_s1 + $0x2e8] sm:$0xff]  ;;  %v83_v2 = vld [vmem:[%s833_s1 + $0x190] sm:$0xff] }
  0x17   :  { %171 = vmatpush.msra.mxu1 %v54_v34  ;;  %209 = vmatpush.msra.mxu3 %v88_v44  ;;  %v66_v1 = vld [vmem:[%s833_s1 + $0x108] sm:$0xff]  ;;  %v109_v3 = vld [vmem:[%s833_s1 + $0x260] sm:$0xff]  ;;  %v108_v7 = vld [vmem:[%s833_s1 + $0x258] sm:$0xff] }
  0x18   :  { %152 = vmatpush.msra.mxu0 %v37_v37  ;;  %190 = vmatpush.msra.mxu2 %v71_v43  ;;  %v125_v4 = vld [vmem:[%s833_s1 + $0x2e0] sm:$0xff]  ;;  %v82_v6 = vld [vmem:[%s833_s1 + $0x188] sm:$0xff]  ;;  %v124_v8 = vld [vmem:[%s833_s1 + $0x2d8] sm:$0xff] }
  0x19   :  { %172 = vmatpush.msra.mxu1 %v53_v38  ;;  %210 = vmatpush.msra.mxu3 %v87_v48  ;;  %v65_v5 = vld [vmem:[%s833_s1 + $0x100] sm:$0xff]  ;;  %v28_v9 = vld [vmem:[%s834_s0 + $0x10] sm:$0xff]  ;;  %v132_v13 = vld [vmem:[%s833_s1 + $0x318] sm:$0xff] }
  0x1a   :  { %153 = vmatpush.msra.mxu0 %v36_v41  ;;  %191 = vmatpush.msra.mxu2 %v70_v47  ;;  %v81_v10 = vld [vmem:[%s833_s1 + $0x180] sm:$0xff]  ;;  %v107_v11 = vld [vmem:[%s833_s1 + $0x250] sm:$0xff]  ;;  %v106_v15 = vld [vmem:[%s833_s1 + $0x248] sm:$0xff] }
  0x1b   :  { %173 = vmatpush.msra.mxu1 %v52_v42  ;;  %211 = vmatpush.msra.mxu3 %v86_v52  ;;  %v123_v12 = vld [vmem:[%s833_s1 + $0x2d0] sm:$0xff]  ;;  %v26_v14 = vld [vmem:[%s834_s0] sm:$0xff]  ;;  %v122_v16 = vld [vmem:[%s833_s1 + $0x2c8] sm:$0xff] }
  0x1c   :  { %154 = vmatpush.msra.mxu0 %v35_v45  ;;  %192 = vmatpush.msra.mxu2 %v69_v51  ;;  %v29_v17 = vld [vmem:[%s834_s0 + $0x18] sm:$0xff]  ;;  %v131_v18 = vld [vmem:[%s833_s1 + $0x310] sm:$0xff]  ;;  %v105_v19 = vld [vmem:[%s833_s1 + $0x240] sm:$0xff] }
  0x1d   :  { %174 = vmatpush.msra.mxu1 %v51_v46  ;;  %212 = vmatpush.msra.mxu3 %v85_v58  ;;  %v121_v20 = vld [vmem:[%s833_s1 + $0x2c0] sm:$0xff]  ;;  %v27_v21 = vld [vmem:[%s834_s0 + $0x8] sm:$0xff]  ;;  %v104_v23 = vld [vmem:[%s833_s1 + $0x238] sm:$0xff] }
  0x1e   :  { %155 = vmatpush.msra.mxu0 %v34_v49  ;;  %193 = vmatpush.msra.mxu2 %v68_v57  ;;  %v130_v22 = vld [vmem:[%s833_s1 + $0x308] sm:$0xff]  ;;  %v120_v24 = vld [vmem:[%s833_s1 + $0x2b8] sm:$0xff]  ;;  %v129_v25 = vld [vmem:[%s833_s1 + $0x300] sm:$0xff] }
  0x1f   :  { %175 = vmatpush.msra.mxu1 %v50_v50  ;;  %213 = vmatpush.msra.mxu3 %v84_v62  ;;  %v296_v26 = vld [vmem:[%s836_s3 + $0x70] sm:$0xff]  ;;  %v295_v30 = vld [vmem:[%s836_s3 + $0x68] sm:$0xff]  ;;  %v294_v33 = vld [vmem:[%s836_s3 + $0x60] sm:$0xff] }
  0x20   :  { %156 = vmatpush.msra.mxu0 %v33_v53  ;;  %194 = vmatpush.msra.mxu2 %v67_v61  ;;  %v103_v27 = vld [vmem:[%s833_s1 + $0x230] sm:$0xff]  ;;  %v102_v31 = vld [vmem:[%s833_s1 + $0x228] sm:$0xff]  ;;  %v101_v34 = vld [vmem:[%s833_s1 + $0x220] sm:$0xff] }
  0x21   :  { %176 = vmatpush.msra.mxu1 %v49_v54  ;;  %214 = vmatpush.msra.mxu3 %v83_v2  ;;  %v119_v28 = vld [vmem:[%s833_s1 + $0x2b0] sm:$0xff]  ;;  %v118_v32 = vld [vmem:[%s833_s1 + $0x2a8] sm:$0xff]  ;;  %v117_v35 = vld [vmem:[%s833_s1 + $0x2a0] sm:$0xff] }
  0x22   :  { %221 = vmatpush.msrb.mxu0 %v112_v55  ;;  %195 = vmatpush.msra.mxu2 %v66_v1  ;;  %v32_v29 = vld [vmem:[%s834_s0 + $0x30] sm:$0xff]  ;;  %v293_v36 = vld [vmem:[%s836_s3 + $0x58] sm:$0xff]  ;;  %v291_v42 = vld [vmem:[%s836_s3 + $0x48] sm:$0xff] }
  0x23   :  { %241 = vmatpush.msrb.mxu1 %v128_v56  ;;  %215 = vmatpush.msra.mxu3 %v82_v6  ;;  %v100_v37 = vld [vmem:[%s833_s1 + $0x218] sm:$0xff]  ;;  %v292_v39 = vld [vmem:[%s836_s3 + $0x50] sm:$0xff]  ;;  %v98_v43 = vld [vmem:[%s833_s1 + $0x208] sm:$0xff] }
  0x24   :  { %222 = vmatpush.msrb.mxu0 %v111_v59  ;;  %196 = vmatpush.msra.mxu2 %v65_v5  ;;  %v116_v38 = vld [vmem:[%s833_s1 + $0x298] sm:$0xff]  ;;  %v99_v40 = vld [vmem:[%s833_s1 + $0x210] sm:$0xff]  ;;  %v114_v44 = vld [vmem:[%s833_s1 + $0x288] sm:$0xff] }
  0x25   :  { %242 = vmatpush.msrb.mxu1 %v127_v60  ;;  %197 = vmatmul.f32.vlgmr.msra.gmra.mxu2 %v28_v9  ;;  %v115_v41 = vld [vmem:[%s833_s1 + $0x290] sm:$0xff]  ;;  %v97_v45 = vld [vmem:[%s833_s1 + $0x200] sm:$0xff]  ;;  %v31_v48 = vld [vmem:[%s834_s0 + $0x28] sm:$0xff] }
  0x26   :  { %223 = vmatpush.msrb.mxu0 %v110_v63  ;;  %216 = vmatpush.msra.mxu3 %v81_v10  ;;  %v113_v46 = vld [vmem:[%s833_s1 + $0x280] sm:$0xff]  ;;  %v289_v50 = vld [vmem:[%s836_s3 + $0x38] sm:$0xff]  ;;  %v288_v51 = vld [vmem:[%s836_s3 + $0x30] sm:$0xff] }
  0x27   :  { %243 = vmatpush.msrb.mxu1 %v126_v0  ;;  %273 = vmatpush.msrb.mxu2 %v132_v13  ;;  %v30_v47 = vld [vmem:[%s834_s0 + $0x20] sm:$0xff]  ;;  %v287_v52 = vld [vmem:[%s836_s3 + $0x28] sm:$0xff]  ;;  %v285_v54 = vld [vmem:[%s836_s3 + $0x18] sm:$0xff] }
  0x28   :  { %224 = vmatpush.msrb.mxu0 %v109_v3  ;;  %217 = vmatmul.f32.vlgmr.msra.gmra.mxu3 %v29_v17  ;;  %v290_v49 = vld [vmem:[%s836_s3 + $0x40] sm:$0xff]  ;;  %v284_v55 = vld [vmem:[%s836_s3 + $0x10] sm:$0xff]  ;;  %v283_v56 = vld [vmem:[%s836_s3 + $0x8] sm:$0xff] }
  0x29   :  { %244 = vmatpush.msrb.mxu1 %v125_v4  ;;  %157 = vmatmul.f32.vlgmr.msra.gmra.mxu0 %v26_v14  ;;  %v286_v53 = vld [vmem:[%s836_s3 + $0x20] sm:$0xff]  ;;  %v336_v58 = vld [vmem:[%s838_s5 + $0x50] sm:$0xf]  ;;  %v335_v59 = vld [vmem:[%s838_s5 + $0x48] sm:$0xff] }
  0x2a   :  { %225 = vmatpush.msrb.mxu0 %v108_v7  ;;  %274 = vmatpush.msrb.mxu2 %v131_v18  ;;  %v282_v57 = vld [vmem:[%s836_s3] sm:$0xff]  ;;  %v333_v62 = vld [vmem:[%s838_s5 + $0x38] sm:$0xff]  ;;  %v332_v0 = vld [vmem:[%s838_s5 + $0x30] sm:$0xff] }
  0x2b   :  { %245 = vmatpush.msrb.mxu1 %v124_v8  ;;  %306 = vmatpush.msrb.mxu3 %v296_v26  ;;  %v334_v60 = vld [vmem:[%s838_s5 + $0x40] sm:$0xff]  ;;  %v331_v2 = vld [vmem:[%s838_s5 + $0x28] sm:$0xff]  ;;  %v329_v6 = vld [vmem:[%s838_s5 + $0x18] sm:$0xff] }
  0x2c   :  { %226 = vmatpush.msrb.mxu0 %v107_v11  ;;  %177 = vmatmul.f32.vlgmr.msra.gmra.mxu1 %v27_v21  ;;  %v379_v61 = vld [vmem:[%s835_s2] ss:$0 sm:$0xff]  ;;  %v328_v18 = vld [vmem:[%s838_s5 + $0x10] sm:$0xff] }
  0x2d   :  { %246 = vmatpush.msrb.mxu1 %v123_v12  ;;  %275 = vmatpush.msrb.mxu2 %v130_v22  ;;  %v330_v4 = vld [vmem:[%s838_s5 + $0x20] sm:$0xff] }
  0x2e   :  { %227 = vmatpush.msrb.mxu0 %v106_v15  ;;  %307 = vmatpush.msrb.mxu3 %v295_v30  ;;  %v380_v21 = vld [vmem:[%s837_s4] ss:$0 sm:$0xff] }
  0x2f   :  { %247 = vmatpush.msrb.mxu1 %v122_v16  ;;  %276 = vmatpush.msrb.mxu2 %v129_v25  ;;  %v381_v25 = vld [vmem:[%s839_s6] ss:$0 sm:$0xff] }
  0x30   :  { %228 = vmatpush.msrb.mxu0 %v105_v19  ;;  %375 = vmatmul.msk.f32.vlgmr.msrb.gmra.mxu2 %vm137_vm0, %v32_v29  ;;  %v327_v19 = vld [vmem:[%s838_s5 + $0x8] sm:$0xff] }
  0x31   :  { %248 = vmatpush.msrb.mxu1 %v121_v20  ;;  %308 = vmatpush.msrb.mxu3 %v294_v33  ;;  %v326_v20 = vld [vmem:[%s838_s5] sm:$0xff] }
  0x32   :  { %229 = vmatpush.msrb.mxu0 %v104_v23  ;;  %377 = vmatpush.msk.msra.mxu2 %vm345_vm1, %v336_v58 }
  0x33   :  { %249 = vmatpush.msrb.mxu1 %v120_v24  ;;  %309 = vmatpush.msrb.mxu3 %v293_v36 }
  0x34   :  { %230 = vmatpush.msrb.mxu0 %v103_v27  ;;  %355 = vmatpush.msra.mxu2 %v335_v59 }
  0x35   :  { %250 = vmatpush.msrb.mxu1 %v119_v28  ;;  %310 = vmatpush.msrb.mxu3 %v292_v39 }
  0x36   :  { %231 = vmatpush.msrb.mxu0 %v102_v31  ;;  %356 = vmatpush.msra.mxu2 %v334_v60 }
  0x37   :  { %251 = vmatpush.msrb.mxu1 %v118_v32  ;;  %311 = vmatpush.msrb.mxu3 %v291_v42 }
  0x38   :  { %232 = vmatpush.msrb.mxu0 %v101_v34  ;;  %357 = vmatpush.msra.mxu2 %v333_v62 }
  0x39   :  { %252 = vmatpush.msrb.mxu1 %v117_v35  ;;  %312 = vmatpush.msrb.mxu3 %v290_v49 }
  0x3a   :  { %233 = vmatpush.msrb.mxu0 %v100_v37  ;;  %358 = vmatpush.msra.mxu2 %v332_v0 }
  0x3b   :  { %253 = vmatpush.msrb.mxu1 %v116_v38  ;;  %313 = vmatpush.msrb.mxu3 %v289_v50 }
  0x3c   :  { %234 = vmatpush.msrb.mxu0 %v99_v40  ;;  %359 = vmatpush.msra.mxu2 %v331_v2 }
  0x3d   :  { %254 = vmatpush.msrb.mxu1 %v115_v41  ;;  %314 = vmatpush.msrb.mxu3 %v288_v51 }
  0x3e   :  { %235 = vmatpush.msrb.mxu0 %v98_v43  ;;  %360 = vmatpush.msra.mxu2 %v330_v4 }
  0x3f   :  { %255 = vmatpush.msrb.mxu1 %v114_v44  ;;  %315 = vmatpush.msrb.mxu3 %v287_v52 }
  0x40   :  { %236 = vmatpush.msrb.mxu0 %v97_v45  ;;  %361 = vmatpush.msra.mxu2 %v329_v6 }
  0x41   :  { %256 = vmatpush.msrb.mxu1 %v113_v46  ;;  %237 = vmatmul.f32.vlgmr.msrb.gmra.mxu0 %v30_v47 }
  0x42   :  { %257 = vmatmul.f32.vlgmr.msrb.gmra.mxu1 %v31_v48  ;;  %316 = vmatpush.msrb.mxu3 %v286_v53 }
  0x43   :  { %362 = vmatpush.msra.mxu2 %v328_v18 }
  0x44   :  { %317 = vmatpush.msrb.mxu3 %v285_v54 }
  0x45   :  { %363 = vmatpush.msra.mxu2 %v327_v19 }
  0x46   :  { %318 = vmatpush.msrb.mxu3 %v284_v55 }
  0x47   :  { %364 = vmatpush.msra.mxu2 %v326_v20 }
  0x48   :  { %319 = vmatpush.msrb.mxu3 %v283_v56 }
  0x4a   :  { %320 = vmatpush.msrb.mxu3 %v282_v57 }
  0xa6   :  { %v158_v63 = vpop.f32.mrf.mxu0 }
  0xa7   :  { %v159_v1 = vadd.f32 %v379_v61, %v158_v63 }
  0xa8   :  { %v198_v7 = vpop.f32.mrf.mxu2 }
  0xa9   :  { %v178_v3 = vpop.f32.mrf.mxu1 }
  0xaa   :  { %v179_v5 = vadd.f32 %v178_v3, %v159_v1 }
  0xab   :  { %v218_v9 = vpop.f32.mrf.mxu3 }
  0xac   :  { %v199_v8 = vadd.f32 %v198_v7, %v179_v5 }
  0xae   :  { %v219_v10 = vadd.f32 %v218_v9, %v199_v8 }
  0xb3   :  { %v278_v14 = vpop.f32.mrf.mxu2 }
  0xbe   :  { %v238_v11 = vpop.f32.mrf.mxu0 }
  0xbf   :  { %v258_v12 = vpop.f32.mrf.mxu1  ;;  %v239_v13 = vadd.f32 %v238_v11, %v219_v10 }
  0xc1   :  { %v259_v15 = vadd.f32 %v258_v12, %v239_v13 }
  0xc3   :  { %v279_v16 = vadd.f32 %v278_v14, %v259_v15 }
  0xc5   :  { %v281_v17 = vmax.f32 %v279_v16, 0.0 }
  0xc7   :  { %376 = vmatmul.msk.f32.vlgmr.msrb.gmra.mxu3 %vm301_vm2, %v281_v17 }
 0x14a   :  { %v322_v22 = vpop.f32.mrf.mxu3 }
 0x14b   :  { %v323_v23 = vadd.f32 %v380_v21, %v322_v22 }
 0x14d   :  { %v325_v24 = vmax.f32 %v323_v23, 0.0 }
 0x14f   :  { %378 = vmatmul.msk.f32.vlgmr.msra.gmra.mxu2 %vm341_vm3, %v325_v24 }
 0x1d2   :  { %v366_v26 = vpop.f32.mrf.mxu2 }
 0x1d3   :  { %v367_v27 = vadd.f32 %v381_v25, %v366_v26 }
 0x1d5   :  { %370 = vst.msk [vmem:[%s840_s7] sm:$0xff] %vm369_vm4, %v367_v27 }

</bundles_post_ra>
